<compile_context>
chip_gen: v7x
topology: tpu7x:2x2x1
jax: 0.10.0
libtpu: 0.0.40
codegen_flags: <defaults>
</compile_context>

<pallas_src>
import jax
import jax.numpy as jnp
from jax.experimental import pallas as pl
from jax.experimental.pallas import tpu as pltpu


def _se_kernel(x_ref, f1_ref, b1_ref, f2_ref, b2_ref, o_ref):
    x = x_ref[...]                                            # (Bt, CHWp), input dtype

    # Squeeze (global avg pool) + FC1 fused into a single MXU matmul.
    h = jnp.dot(x, f1_ref[...], preferred_element_type=jnp.float32)   # (Bt, mid)
    h = jnp.maximum(h + b1_ref[...], 0.0)                              # ReLU

    # FC2 + per-channel gate broadcast fused (sigmoid commutes with 0/1 dup).
    s = jnp.dot(h, f2_ref[...], preferred_element_type=jnp.float32)   # (Bt, CHWp)
    gate = jax.nn.sigmoid(s + b2_ref[...])                             # f32

    # Scale and store in the caller's dtype (no full-tile f32 copy of x).
    o_ref[...] = (x * gate.astype(x.dtype)).astype(o_ref.dtype)


def _round_up(a, m):
    return (a + m - 1) // m * m


def _pick_batch_tile(n, row_bytes, target_tile_bytes=4 * 1024 * 1024):
    """Batch-tile size: a multiple of 8 (sublane rule), sized toward
    ~target_tile_bytes per x tile, never (much) larger than the batch."""
    bt = max(8, (target_tile_bytes // max(row_bytes, 1)) // 8 * 8)
    bt = min(bt, _round_up(n, 8))
    return bt


def se_block(x, w1, b1, w2, b2):
    """x: (N, C, H, W); w1: (mid, C); b1: (mid,); w2: (C, mid); b2: (C,)."""
    N, C, H, W = x.shape
    mid = w1.shape[0]
    HW = H * W
    CHW = C * HW
    CHWp = _round_up(CHW, 128)            # lane-dense output path

    x_flat = x.reshape(N, CHW)            # free reshape (contiguous NCHW)
    if CHWp != CHW:
        x_flat = jnp.pad(x_flat, ((0, 0), (0, CHWp - CHW)))

    row_bytes = CHWp * x.dtype.itemsize
    bt = _pick_batch_tile(N, row_bytes)
    Np = _round_up(max(N, bt), bt)        # pad rows so bt | Np and bt % 8 == 0
    if Np != N:
        x_flat = jnp.pad(x_flat, ((0, Np - N), (0, 0)))
    grid = (Np // bt,)

    # Fused constants (tiny: O(mid * CHW)).  Weights cast to x's dtype so a
    # bf16 input feeds the MXU's bf16 path; biases stay f32 (added to f32 acc).
    cdtype = jnp.bfloat16 if x.dtype == jnp.bfloat16 else jnp.float32
    w1t = w1.astype(jnp.float32).T                         # (C, mid)
    w2t = w2.astype(jnp.float32).T                         # (mid, C)
    f1 = jnp.repeat(w1t / HW, HW, axis=0)                  # (CHW, mid)  pool∘FC1
    f2 = jnp.repeat(w2t, HW, axis=1)                       # (mid, CHW)  FC2∘bcast
    b2_full = jnp.repeat(b2.astype(jnp.float32), HW).reshape(1, CHW)
    if CHWp != CHW:
        f1 = jnp.pad(f1, ((0, CHWp - CHW), (0, 0)))
        f2 = jnp.pad(f2, ((0, 0), (0, CHWp - CHW)))
        b2_full = jnp.pad(b2_full, ((0, 0), (0, CHWp - CHW)))
    f1 = f1.astype(cdtype)
    f2 = f2.astype(cdtype)
    b1_2d = b1.astype(jnp.float32).reshape(1, mid)

    out_flat = pl.pallas_call(
        _se_kernel,
        out_shape=jax.ShapeDtypeStruct((Np, CHWp), x.dtype),
        grid=grid,
        in_specs=[
            pl.BlockSpec((bt, CHWp), lambda g: (g, 0)),     # x tile (lane-dense)
            pl.BlockSpec((CHWp, mid), lambda g: (0, 0)),    # fused pool∘W1 (resident)
            pl.BlockSpec((1, mid), lambda g: (0, 0)),       # b1
            pl.BlockSpec((mid, CHWp), lambda g: (0, 0)),    # fused W2∘bcast (resident)
            pl.BlockSpec((1, CHWp), lambda g: (0, 0)),      # b2 broadcast
        ],
        out_specs=pl.BlockSpec((bt, CHWp), lambda g: (g, 0)),
        compiler_params=pltpu.CompilerParams(
            dimension_semantics=("parallel",),
            vmem_limit_bytes=32 * 1024 * 1024),
    )(x_flat, f1, b1_2d, f2, b2_full)

    return out_flat[:N, :CHW].reshape(N, C, H, W)


def se_block_ref(x, w1, b1, w2, b2):
    """Pure-JAX reference (matches the PyTorch SEBlock forward)."""
    pooled = jnp.mean(x, axis=(2, 3), keepdims=True)                   # (N, C, 1, 1)
    h = jnp.einsum('nchw,mc->nmhw', pooled, w1) + b1[None, :, None, None]
    h = jnp.maximum(h, 0.0)
    s = jnp.einsum('nmhw,cm->nchw', h, w2) + b2[None, :, None, None]
    gate = jax.nn.sigmoid(s)
    return x * gate


if __name__ == "__main__":
    # Module config: channels=32, reduction=16 -> mid_channels=2.
    N, C, H, W = 16, 32, 8, 8
    reduction = 16
    mid = C // reduction

    key = jax.random.PRNGKey(0)
    kx, k1, k2, k3, k4 = jax.random.split(key, 5)

    x = jax.random.normal(kx, (N, C, H, W), dtype=jnp.float32)
    # Deterministic synthetic parameters (1x1 conv weights reshaped to 2D).
    w1 = jax.random.normal(k1, (mid, C), dtype=jnp.float32) * 0.1
    b1 = jax.random.normal(k2, (mid,), dtype=jnp.float32) * 0.1
    w2 = jax.random.normal(k3, (C, mid), dtype=jnp.float32) * 0.1
    b2 = jax.random.normal(k4, (C,), dtype=jnp.float32) * 0.1

    out = jax.block_until_ready(se_block(x, w1, b1, w2, b2))
    ref = se_block_ref(x, w1, b1, w2, b2)

    assert out.shape == (N, C, H, W)
    assert jnp.allclose(out, ref, atol=1e-4, rtol=1e-4), "mismatch vs reference"

    print("KERNEL_OK")
</pallas_src>

<mosaic_0001>
module attributes {stable_mosaic.version = 11 : i64} {
  func.func @_se_kernel(%arg0: i32, %arg1: memref<16x2048xf32, #tpu.memory_space<vmem>>, %arg2: memref<2048x2xf32, #tpu.memory_space<vmem>>, %arg3: memref<1x2xf32, #tpu.memory_space<vmem>>, %arg4: memref<2x2048xf32, #tpu.memory_space<vmem>>, %arg5: memref<1x2048xf32, #tpu.memory_space<vmem>>, %arg6: memref<16x2048xf32, #tpu.memory_space<vmem>>) attributes {dimension_semantics = [#tpu.dimension_semantics<parallel>], iteration_bounds = array<i64: 1>, scalar_prefetch = 0 : i64, scratch_operands = 0 : i64, tpu.core_type = #tpu.core_type<tc>, window_params = [{transform_indices = @transform_0, window_bounds = array<i64: 16, 2048>}, {pipeline_mode = #tpu.pipeline_mode<synchronous>, transform_indices = @transform_1, window_bounds = array<i64: 2048, 2>}, {pipeline_mode = #tpu.pipeline_mode<synchronous>, transform_indices = @transform_2, window_bounds = array<i64: 1, 2>}, {pipeline_mode = #tpu.pipeline_mode<synchronous>, transform_indices = @transform_3, window_bounds = array<i64: 2, 2048>}, {pipeline_mode = #tpu.pipeline_mode<synchronous>, transform_indices = @transform_4, window_bounds = array<i64: 1, 2048>}, {transform_indices = @transform_5, window_bounds = array<i64: 16, 2048>}]} {
    %c0 = arith.constant 0 : index
    %c0_0 = arith.constant 0 : index
    %0 = vector.load %arg1[%c0, %c0_0] : memref<16x2048xf32, #tpu.memory_space<vmem>>, vector<16x2048xf32>
    %c0_1 = arith.constant 0 : index
    %c0_2 = arith.constant 0 : index
    %1 = vector.load %arg2[%c0_1, %c0_2] : memref<2048x2xf32, #tpu.memory_space<vmem>>, vector<2048x2xf32>
    %cst = arith.constant dense<0.000000e+00> : vector<16x2xf32>
    %2 = tpu.matmul %0, %1, %cst {dimension_numbers = #tpu.dot_dimension_numbers<[1], [0], [0], [1], [0, 0, 1, 1], [], []>} : vector<16x2048xf32>, vector<2048x2xf32>, vector<16x2xf32> -> vector<16x2xf32>
    %c0_3 = arith.constant 0 : index
    %c0_4 = arith.constant 0 : index
    %3 = vector.load %arg3[%c0_3, %c0_4] : memref<1x2xf32, #tpu.memory_space<vmem>>, vector<1x2xf32>
    %4 = vector.broadcast %3 : vector<1x2xf32> to vector<16x2xf32>
    %5 = arith.addf %2, %4 : vector<16x2xf32>
    %cst_5 = arith.constant 0.000000e+00 : f32
    %6 = vector.broadcast %cst_5 : f32 to vector<16x2xf32>
    %7 = arith.maximumf %5, %6 : vector<16x2xf32>
    %c0_6 = arith.constant 0 : index
    %c0_7 = arith.constant 0 : index
    %8 = vector.load %arg4[%c0_6, %c0_7] : memref<2x2048xf32, #tpu.memory_space<vmem>>, vector<2x2048xf32>
    %cst_8 = arith.constant dense<0.000000e+00> : vector<16x2048xf32>
    %9 = tpu.matmul %7, %8, %cst_8 {dimension_numbers = #tpu.dot_dimension_numbers<[1], [0], [0], [1], [0, 0, 1, 1], [], []>} : vector<16x2xf32>, vector<2x2048xf32>, vector<16x2048xf32> -> vector<16x2048xf32>
    %c0_9 = arith.constant 0 : index
    %c0_10 = arith.constant 0 : index
    %10 = vector.load %arg5[%c0_9, %c0_10] : memref<1x2048xf32, #tpu.memory_space<vmem>>, vector<1x2048xf32>
    %11 = vector.broadcast %10 : vector<1x2048xf32> to vector<16x2048xf32>
    %12 = arith.addf %9, %11 : vector<16x2048xf32>
    %13 = arith.negf %12 : vector<16x2048xf32>
    %14 = math.exp %13 : vector<16x2048xf32>
    %cst_11 = arith.constant 1.000000e+00 : f32
    %15 = vector.broadcast %cst_11 : f32 to vector<16x2048xf32>
    %16 = arith.addf %15, %14 : vector<16x2048xf32>
    %17 = arith.divf %15, %16 : vector<16x2048xf32>
    %18 = arith.mulf %0, %17 : vector<16x2048xf32>
    %c0_12 = arith.constant 0 : index
    %c0_13 = arith.constant 0 : index
    %19 = vector.load %arg6[%c0_12, %c0_13] : memref<16x2048xf32, #tpu.memory_space<vmem>>, vector<16x2048xf32>
    tpu.vector_store %arg6[%c0_12, %c0_13], %18 {strides = array<i32>} : memref<16x2048xf32, #tpu.memory_space<vmem>>, vector<16x2048xf32>,
    return
  }
  func.func @transform_0(%arg0: i32) -> (i32, i32) {
    %c0_i32 = arith.constant 0 : i32
    %c0_i32_0 = arith.constant 0 : i32
    return %arg0, %c0_i32 : i32, i32
  }
  func.func @transform_1(%arg0: i32) -> (i32, i32) {
    %c0_i32 = arith.constant 0 : i32
    %c0_i32_0 = arith.constant 0 : i32
    %c0_i32_1 = arith.constant 0 : i32
    return %c0_i32, %c0_i32_0 : i32, i32
  }
  func.func @transform_2(%arg0: i32) -> (i32, i32) {
    %c0_i32 = arith.constant 0 : i32
    %c0_i32_0 = arith.constant 0 : i32
    %c0_i32_1 = arith.constant 0 : i32
    return %c0_i32, %c0_i32_0 : i32, i32
  }
  func.func @transform_3(%arg0: i32) -> (i32, i32) {
    %c0_i32 = arith.constant 0 : i32
    %c0_i32_0 = arith.constant 0 : i32
    %c0_i32_1 = arith.constant 0 : i32
    return %c0_i32, %c0_i32_0 : i32, i32
  }
  func.func @transform_4(%arg0: i32) -> (i32, i32) {
    %c0_i32 = arith.constant 0 : i32
    %c0_i32_0 = arith.constant 0 : i32
    %c0_i32_1 = arith.constant 0 : i32
    return %c0_i32, %c0_i32_0 : i32, i32
  }
  func.func @transform_5(%arg0: i32) -> (i32, i32) {
    %c0_i32 = arith.constant 0 : i32
    %c0_i32_0 = arith.constant 0 : i32
    return %arg0, %c0_i32 : i32, i32
  }
}

</mosaic_0001>

<bundles_post_ra>
// kernel: tpu_custom_call.1
= control target key start
LH: loop header
LB: loop body
LE: loop exit
PB: predicated region body
PF: predicated region fallthrough
CT: control target
= control target key end

     0   :  { %s4026_s0 = inlined_call_operand.vmem [shape: f32[16,2048], index: 0, kind: input, shape index: {}]   ;;  %s4027_s1 = inlined_call_operand.vmem [shape: f32[2048,2], index: 1, kind: input, shape index: {}]   ;;  %s4028_s2 = inlined_call_operand.vmem [shape: f32[1,2], index: 2, kind: input, shape index: {}]   ;;  %s4029_s3 = inlined_call_operand.vmem [shape: f32[2,2048], index: 3, kind: input, shape index: {}]   ;;  %s4030_s4 = inlined_call_operand.vmem [shape: f32[1,2048], index: 4, kind: input, shape index: {}]   ;;  %s4031_s5 = inlined_call_operand.hbm [shape: f32[16,2048], index: 5, kind: output, shape index: {}]  }
   0x1   :  { %v69_v0 = vld [vmem:[%s4027_s1 + $0x80] sm:$0xff]  ;;  %v70_v1 = vld [vmem:[%s4027_s1 + $0x88] sm:$0xff]  ;;  %v71_v11 = vld [vmem:[%s4027_s1 + $0x90] sm:$0xff] }
   0x2   :  { %v53_v2 = vld [vmem:[%s4027_s1] sm:$0xff]  ;;  %v2375_v3 = vpack.c.bf16 %v70_v1, %v69_v0  ;;  %v54_v4 = vld [vmem:[%s4027_s1 + $0x8] sm:$0xff]  ;;  %v72_v13 = vld [vmem:[%s4027_s1 + $0x98] sm:$0xff] }
   0x3   :  { %v101_v5 = vld [vmem:[%s4027_s1 + $0x180] sm:$0xff]  ;;  %v102_v6 = vld [vmem:[%s4027_s1 + $0x188] sm:$0xff]  ;;  %v2377_v7 = vpack.c.bf16 %v54_v4, %v53_v2  ;;  %v55_v14 = vld [vmem:[%s4027_s1 + $0x10] sm:$0xff]  ;;  %v2379_v16 = vpack.c.bf16 %v72_v13, %v71_v11 }
   0x4   :  { %v2407_v8 = vpack.c.bf16 %v102_v6, %v101_v5  ;;  %v85_v9 = vld [vmem:[%s4027_s1 + $0x100] sm:$0xff]  ;;  %v86_v10 = vld [vmem:[%s4027_s1 + $0x108] sm:$0xff]  ;;  %2376 = vmatprep.subr.bf16.mxu0 %v2375_v3  ;;  %v56_v15 = vld [vmem:[%s4027_s1 + $0x18] sm:$0xff] }
   0x5   :  { %v2409_v12 = vpack.c.bf16 %v86_v10, %v85_v9  ;;  %2378 = vmatpush3.bf16.msra.mxu0 %v2377_v7  ;;  %v2381_v17 = vpack.c.bf16 %v56_v15, %v55_v14  ;;  %v103_v18 = vld [vmem:[%s4027_s1 + $0x190] sm:$0xff]  ;;  %v104_v19 = vld [vmem:[%s4027_s1 + $0x198] sm:$0xff]  ;;  %v73_v23 = vld [vmem:[%s4027_s1 + $0xa0] sm:$0xff] }
   0x6   :  { %2408 = vmatprep.subr.bf16.mxu1 %v2407_v8  ;;  %v87_v20 = vld [vmem:[%s4027_s1 + $0x110] sm:$0xff]  ;;  %v2411_v21 = vpack.c.bf16 %v104_v19, %v103_v18  ;;  %v88_v22 = vld [vmem:[%s4027_s1 + $0x118] sm:$0xff]  ;;  %v74_v24 = vld [vmem:[%s4027_s1 + $0xa8] sm:$0xff]  ;;  %2380 = vmatprep.subr.bf16.mxu0 %v2379_v16 }
   0x7   :  { %2410 = vmatpush3.bf16.msra.mxu1 %v2409_v12  ;;  %v2413_v25 = vpack.c.bf16 %v88_v22, %v87_v20  ;;  %v2383_v26 = vpack.c.bf16 %v74_v24, %v73_v23  ;;  %v57_v27 = vld [vmem:[%s4027_s1 + $0x20] sm:$0xff]  ;;  %v58_v28 = vld [vmem:[%s4027_s1 + $0x28] sm:$0xff]  ;;  %v75_v35 = vld [vmem:[%s4027_s1 + $0xb0] sm:$0xff] }
   0x8   :  { %v105_v29 = vld [vmem:[%s4027_s1 + $0x1a0] sm:$0xff]  ;;  %2412 = vmatprep.subr.bf16.mxu1 %v2411_v21  ;;  %v106_v30 = vld [vmem:[%s4027_s1 + $0x1a8] sm:$0xff]  ;;  %v2385_v33 = vpack.c.bf16 %v58_v28, %v57_v27  ;;  %v76_v36 = vld [vmem:[%s4027_s1 + $0xb8] sm:$0xff] }
   0x9   :  { %v89_v31 = vld [vmem:[%s4027_s1 + $0x120] sm:$0xff]  ;;  %v90_v32 = vld [vmem:[%s4027_s1 + $0x128] sm:$0xff]  ;;  %2382 = vmatpush3.bf16.msra.mxu0 %v2381_v17  ;;  %v2415_v34 = vpack.c.bf16 %v106_v30, %v105_v29  ;;  %v59_v37 = vld [vmem:[%s4027_s1 + $0x30] sm:$0xff]  ;;  %v2387_v39 = vpack.c.bf16 %v76_v36, %v75_v35 }
   0xa   :  { %2384 = vmatprep.subr.bf16.mxu0 %v2383_v26  ;;  %v2417_v38 = vpack.c.bf16 %v90_v32, %v89_v31  ;;  %v60_v40 = vld [vmem:[%s4027_s1 + $0x38] sm:$0xff]  ;;  %v107_v41 = vld [vmem:[%s4027_s1 + $0x1b0] sm:$0xff]  ;;  %v77_v46 = vld [vmem:[%s4027_s1 + $0xc0] sm:$0xff] }
   0xb   :  { %2414 = vmatpush3.bf16.msra.mxu1 %v2413_v25  ;;  %v108_v42 = vld [vmem:[%s4027_s1 + $0x1b8] sm:$0xff]  ;;  %v91_v44 = vld [vmem:[%s4027_s1 + $0x130] sm:$0xff]  ;;  %v78_v47 = vld [vmem:[%s4027_s1 + $0xc8] sm:$0xff]  ;;  %v2389_v48 = vpack.c.bf16 %v60_v40, %v59_v37 }
   0xc   :  { %2416 = vmatprep.subr.bf16.mxu1 %v2415_v34  ;;  %v2419_v43 = vpack.c.bf16 %v108_v42, %v107_v41  ;;  %v92_v45 = vld [vmem:[%s4027_s1 + $0x138] sm:$0xff]  ;;  %v109_v49 = vld [vmem:[%s4027_s1 + $0x1c0] sm:$0xff]  ;;  %v110_v50 = vld [vmem:[%s4027_s1 + $0x1c8] sm:$0xff]  ;;  %v2391_v52 = vpack.c.bf16 %v78_v47, %v77_v46 }
   0xd   :  { %2386 = vmatpush3.bf16.msra.mxu0 %v2385_v33  ;;  %v2421_v51 = vpack.c.bf16 %v92_v45, %v91_v44  ;;  %v61_v53 = vld [vmem:[%s4027_s1 + $0x40] sm:$0xff]  ;;  %v62_v54 = vld [vmem:[%s4027_s1 + $0x48] sm:$0xff]  ;;  %v2423_v56 = vpack.c.bf16 %v110_v50, %v109_v49  ;;  %v79_v58 = vld [vmem:[%s4027_s1 + $0xd0] sm:$0xff] }
   0xe   :  { %2388 = vmatprep.subr.bf16.mxu0 %v2387_v39  ;;  %v93_v55 = vld [vmem:[%s4027_s1 + $0x140] sm:$0xff]  ;;  %v94_v57 = vld [vmem:[%s4027_s1 + $0x148] sm:$0xff]  ;;  %v80_v59 = vld [vmem:[%s4027_s1 + $0xd8] sm:$0xff]  ;;  %v2393_v62 = vpack.c.bf16 %v62_v54, %v61_v53 }
   0xf   :  { %2418 = vmatpush3.bf16.msra.mxu1 %v2417_v38  ;;  %v111_v60 = vld [vmem:[%s4027_s1 + $0x1d0] sm:$0xff]  ;;  %v112_v61 = vld [vmem:[%s4027_s1 + $0x1d8] sm:$0xff]  ;;  %v2425_v63 = vpack.c.bf16 %v94_v57, %v93_v55  ;;  %v2395_v0 = vpack.c.bf16 %v80_v59, %v79_v58  ;;  %v81_v6 = vld [vmem:[%s4027_s1 + $0xe0] sm:$0xff] }
  0x10   :  { %2420 = vmatprep.subr.bf16.mxu1 %v2419_v43  ;;  %v63_v1 = vld [vmem:[%s4027_s1 + $0x50] sm:$0xff]  ;;  %v64_v2 = vld [vmem:[%s4027_s1 + $0x58] sm:$0xff]  ;;  %v2427_v4 = vpack.c.bf16 %v112_v61, %v111_v60  ;;  %v82_v7 = vld [vmem:[%s4027_s1 + $0xe8] sm:$0xff] }
  0x11   :  { %2390 = vmatpush3.bf16.msra.mxu0 %v2389_v48  ;;  %v95_v3 = vld [vmem:[%s4027_s1 + $0x150] sm:$0xff]  ;;  %v96_v5 = vld [vmem:[%s4027_s1 + $0x158] sm:$0xff]  ;;  %v113_v8 = vld [vmem:[%s4027_s1 + $0x1e0] sm:$0xff]  ;;  %v2397_v10 = vpack.c.bf16 %v64_v2, %v63_v1  ;;  %v2399_v14 = vpack.c.bf16 %v82_v7, %v81_v6 }
  0x12   :  { %2392 = vmatprep.subr.bf16.mxu0 %v2391_v52  ;;  %v114_v9 = vld [vmem:[%s4027_s1 + $0x1e8] sm:$0xff]  ;;  %v65_v11 = vld [vmem:[%s4027_s1 + $0x60] sm:$0xff]  ;;  %v2429_v13 = vpack.c.bf16 %v96_v5, %v95_v3  ;;  %v83_v19 = vld [vmem:[%s4027_s1 + $0xf0] sm:$0xff] }
  0x13   :  { %2422 = vmatpush3.bf16.msra.mxu1 %v2421_v51  ;;  %v66_v12 = vld [vmem:[%s4027_s1 + $0x68] sm:$0xff]  ;;  %v97_v15 = vld [vmem:[%s4027_s1 + $0x160] sm:$0xff]  ;;  %v2431_v18 = vpack.c.bf16 %v114_v9, %v113_v8  ;;  %v84_v20 = vld [vmem:[%s4027_s1 + $0xf8] sm:$0xff] }
  0x14   :  { %2424 = vmatprep.subr.bf16.mxu1 %v2423_v56  ;;  %v98_v16 = vld [vmem:[%s4027_s1 + $0x168] sm:$0xff]  ;;  %v24_v21 = vld [vmem:[%s4026_s0 + $0x18] sm:$0xff]  ;;  %v115_v22 = vld [vmem:[%s4027_s1 + $0x1f0] sm:$0xff]  ;;  %v2401_v24 = vpack.c.bf16 %v66_v12, %v65_v11  ;;  %v2403_v26 = vpack.c.bf16 %v84_v20, %v83_v19 }
  0x15   :  { %2394 = vmatpush3.bf16.msra.mxu0 %v2393_v62  ;;  %v22_v17 = vld [vmem:[%s4026_s0 + $0x8] sm:$0xff]  ;;  %v116_v23 = vld [vmem:[%s4027_s1 + $0x1f8] sm:$0xff]  ;;  %455 = vmatprep.mubr.f32.mxu1 %v24_v21  ;;  %v2433_v25 = vpack.c.bf16 %v98_v16, %v97_v15  ;;  %v67_v27 = vld [vmem:[%s4027_s1 + $0x70] sm:$0xff] }
  0x16   :  { %2396 = vmatprep.subr.bf16.mxu0 %v2395_v0  ;;  %380 = vmatprep.mubr.f32.mxu0 %v22_v17  ;;  %v68_v28 = vld [vmem:[%s4027_s1 + $0x78] sm:$0xff]  ;;  %v99_v29 = vld [vmem:[%s4027_s1 + $0x170] sm:$0xff]  ;;  %v2435_v30 = vpack.c.bf16 %v116_v23, %v115_v22  ;;  %v133_v32 = vld [vmem:[%s4027_s1 + $0x280] sm:$0xff] }
  0x17   :  { %2426 = vmatpush3.bf16.msra.mxu1 %v2425_v63  ;;  %v100_v31 = vld [vmem:[%s4027_s1 + $0x178] sm:$0xff]  ;;  %v134_v33 = vld [vmem:[%s4027_s1 + $0x288] sm:$0xff]  ;;  %v165_v34 = vld [vmem:[%s4027_s1 + $0x380] sm:$0xff]  ;;  %v2405_v36 = vpack.c.bf16 %v68_v28, %v67_v27 }
  0x18   :  { %2428 = vmatprep.subr.bf16.mxu1 %v2427_v4  ;;  %v166_v35 = vld [vmem:[%s4027_s1 + $0x388] sm:$0xff]  ;;  %v2437_v37 = vpack.c.bf16 %v100_v31, %v99_v29  ;;  %v2439_v38 = vpack.c.bf16 %v134_v33, %v133_v32  ;;  %v117_v39 = vld [vmem:[%s4027_s1 + $0x200] sm:$0xff]  ;;  %v135_v44 = vld [vmem:[%s4027_s1 + $0x290] sm:$0xff] }
  0x19   :  { %2398 = vmatpush3.bf16.msra.mxu0 %v2397_v10  ;;  %v118_v40 = vld [vmem:[%s4027_s1 + $0x208] sm:$0xff]  ;;  %v149_v41 = vld [vmem:[%s4027_s1 + $0x300] sm:$0xff]  ;;  %v2471_v42 = vpack.c.bf16 %v166_v35, %v165_v34  ;;  %v136_v45 = vld [vmem:[%s4027_s1 + $0x298] sm:$0xff] }
  0x1a   :  { %2400 = vmatprep.subr.bf16.mxu0 %v2399_v14  ;;  %v150_v43 = vld [vmem:[%s4027_s1 + $0x308] sm:$0xff]  ;;  %v167_v46 = vld [vmem:[%s4027_s1 + $0x390] sm:$0xff]  ;;  %v168_v47 = vld [vmem:[%s4027_s1 + $0x398] sm:$0xff]  ;;  %v2441_v49 = vpack.c.bf16 %v118_v40, %v117_v39  ;;  %v2443_v52 = vpack.c.bf16 %v136_v45, %v135_v44 }
  0x1b   :  { %2430 = vmatpush3.bf16.msra.mxu1 %v2429_v13  ;;  %v21_v48 = vld [vmem:[%s4026_s0] sm:$0xff]  ;;  %v23_v50 = vld [vmem:[%s4026_s0 + $0x10] sm:$0xff]  ;;  %v2473_v51 = vpack.c.bf16 %v150_v43, %v149_v41  ;;  %v120_v54 = vld [vmem:[%s4027_s1 + $0x218] sm:$0xff]  ;;  %v2475_v56 = vpack.c.bf16 %v168_v47, %v167_v46 }
  0x1c   :  { %2432 = vmatprep.subr.bf16.mxu1 %v2431_v18  ;;  %v119_v53 = vld [vmem:[%s4027_s1 + $0x210] sm:$0xff]  ;;  %v152_v57 = vld [vmem:[%s4027_s1 + $0x318] sm:$0xff]  ;;  %v137_v58 = vld [vmem:[%s4027_s1 + $0x2a0] sm:$0xff] }
  0x1d   :  { %2402 = vmatpush3.bf16.msra.mxu0 %v2401_v24  ;;  %v151_v55 = vld [vmem:[%s4027_s1 + $0x310] sm:$0xff]  ;;  %v138_v59 = vld [vmem:[%s4027_s1 + $0x2a8] sm:$0xff]  ;;  %v169_v60 = vld [vmem:[%s4027_s1 + $0x3a0] sm:$0xff]  ;;  %v2445_v62 = vpack.c.bf16 %v120_v54, %v119_v53 }
  0x1e   :  { %2404 = vmatprep.subr.bf16.mxu0 %v2403_v26  ;;  %v170_v61 = vld [vmem:[%s4027_s1 + $0x3a8] sm:$0xff]  ;;  %v2477_v63 = vpack.c.bf16 %v152_v57, %v151_v55  ;;  %v2447_v0 = vpack.c.bf16 %v138_v59, %v137_v58  ;;  %v121_v1 = vld [vmem:[%s4027_s1 + $0x220] sm:$0xff]  ;;  %v139_v6 = vld [vmem:[%s4027_s1 + $0x2b0] sm:$0xff] }
  0x1f   :  { %2434 = vmatpush3.bf16.msra.mxu1 %v2433_v25  ;;  %v122_v2 = vld [vmem:[%s4027_s1 + $0x228] sm:$0xff]  ;;  %v153_v3 = vld [vmem:[%s4027_s1 + $0x320] sm:$0xff]  ;;  %v2479_v4 = vpack.c.bf16 %v170_v61, %v169_v60  ;;  %v140_v7 = vld [vmem:[%s4027_s1 + $0x2b8] sm:$0xff] }
  0x20   :  { %2436 = vmatprep.subr.bf16.mxu1 %v2435_v30  ;;  %v154_v5 = vld [vmem:[%s4027_s1 + $0x328] sm:$0xff]  ;;  %v171_v8 = vld [vmem:[%s4027_s1 + $0x3b0] sm:$0xff]  ;;  %v172_v9 = vld [vmem:[%s4027_s1 + $0x3b8] sm:$0xff]  ;;  %v2449_v10 = vpack.c.bf16 %v122_v2, %v121_v1  ;;  %v2451_v15 = vpack.c.bf16 %v140_v7, %v139_v6 }
  0x21   :  { %2406 = vmatpush3.bf16.msra.mxu0 %v2405_v36  ;;  %v123_v11 = vld [vmem:[%s4027_s1 + $0x230] sm:$0xff]  ;;  %v124_v12 = vld [vmem:[%s4027_s1 + $0x238] sm:$0xff]  ;;  %v2481_v14 = vpack.c.bf16 %v154_v5, %v153_v3  ;;  %v38_v17 = vld [vmem:[%s4026_s0 + $0x88] sm:$0xff]  ;;  %v2483_v19 = vpack.c.bf16 %v172_v9, %v171_v8 }
  0x22   :  { %2440 = vmatprep.subr.bf16.mxu0 %v2439_v38  ;;  %v155_v13 = vld [vmem:[%s4027_s1 + $0x330] sm:$0xff]  ;;  %v156_v16 = vld [vmem:[%s4027_s1 + $0x338] sm:$0xff]  ;;  %v37_v18 = vld [vmem:[%s4026_s0 + $0x80] sm:$0xff]  ;;  %v2453_v25 = vpack.c.bf16 %v124_v12, %v123_v11 }
  0x23   :  { %2438 = vmatpush3.bf16.msra.mxu1 %v2437_v37  ;;  %v141_v20 = vld [vmem:[%s4027_s1 + $0x2c0] sm:$0xff]  ;;  %v142_v21 = vld [vmem:[%s4027_s1 + $0x2c8] sm:$0xff]  ;;  %v40_v22 = vld [vmem:[%s4026_s0 + $0x98] sm:$0xff]  ;;  %v2485_v29 = vpack.c.bf16 %v156_v16, %v155_v13 }
  0x24   :  { %2472 = vmatprep.subr.bf16.mxu1 %v2471_v42  ;;  %381 = vmatmul.mubr.f32.vlgmr.msra.gmra.mrb[0].mxu0 %v21_v48  ;;  %v173_v23 = vld [vmem:[%s4027_s1 + $0x3c0] sm:$0xff]  ;;  %v174_v24 = vld [vmem:[%s4027_s1 + $0x3c8] sm:$0xff]  ;;  %v39_v28 = vld [vmem:[%s4026_s0 + $0x90] sm:$0xff]  ;;  %v2455_v30 = vpack.c.bf16 %v142_v21, %v141_v20 }
  0x25   :  { %2442 = vmatpush3.bf16.msra.mxu0 %v2441_v49  ;;  %385 = vmatprep.mubr.f32.mxu0 %v38_v17  ;;  %v125_v26 = vld [vmem:[%s4027_s1 + $0x240] sm:$0xff]  ;;  %v126_v27 = vld [vmem:[%s4027_s1 + $0x248] sm:$0xff]  ;;  %v2487_v34 = vpack.c.bf16 %v174_v24, %v173_v23  ;;  %v143_v35 = vld [vmem:[%s4027_s1 + $0x2d0] sm:$0xff] }
  0x26   :  { %456 = vmatmul.mubr.f32.vlgmr.msra.gmra.mrb[0].mxu1 %v23_v50  ;;  %2444 = vmatprep.subr.bf16.mxu0 %v2443_v52  ;;  %v157_v31 = vld [vmem:[%s4027_s1 + $0x340] sm:$0xff]  ;;  %v158_v32 = vld [vmem:[%s4027_s1 + $0x348] sm:$0xff]  ;;  %v144_v36 = vld [vmem:[%s4027_s1 + $0x2d8] sm:$0xff]  ;;  %v2457_v40 = vpack.c.bf16 %v126_v27, %v125_v26 }
  0x27   :  { %2474 = vmatpush3.bf16.msra.mxu1 %v2473_v51  ;;  %460 = vmatprep.mubr.f32.mxu1 %v40_v22  ;;  %v26_v33 = vld [vmem:[%s4026_s0 + $0x28] sm:$0xff]  ;;  %v28_v37 = vld [vmem:[%s4026_s0 + $0x38] sm:$0xff]  ;;  %v175_v38 = vld [vmem:[%s4027_s1 + $0x3d0] sm:$0xff]  ;;  %v2489_v41 = vpack.c.bf16 %v158_v32, %v157_v31  ;;  %v2459_v42 = vpack.c.bf16 %v144_v36, %v143_v35 }
  0x28   :  { %2476 = vmatprep.subr.bf16.mxu1 %v2475_v56  ;;  %386 = vmatmul.mubr.f32.gmra.mrb[2].mxu0 %v37_v18  ;;  %v176_v39 = vld [vmem:[%s4027_s1 + $0x3d8] sm:$0xff]  ;;  %v127_v43 = vld [vmem:[%s4027_s1 + $0x250] sm:$0xff]  ;;  %v145_v48 = vld [vmem:[%s4027_s1 + $0x2e0] sm:$0xff] }
  0x29   :  { %2446 = vmatpush3.bf16.msra.mxu0 %v2445_v62  ;;  %530 = vmatprep.mubr.f32.mxu0 %v26_v33  ;;  %v128_v44 = vld [vmem:[%s4027_s1 + $0x258] sm:$0xff]  ;;  %v159_v45 = vld [vmem:[%s4027_s1 + $0x350] sm:$0xff]  ;;  %v2491_v46 = vpack.c.bf16 %v176_v39, %v175_v38  ;;  %v146_v49 = vld [vmem:[%s4027_s1 + $0x2e8] sm:$0xff] }
  0x2a   :  { %2448 = vmatprep.subr.bf16.mxu0 %v2447_v0  ;;  %461 = vmatmul.mubr.f32.gmra.mrb[2].mxu1 %v39_v28  ;;  %v160_v47 = vld [vmem:[%s4027_s1 + $0x358] sm:$0xff]  ;;  %v177_v50 = vld [vmem:[%s4027_s1 + $0x3e0] sm:$0xff]  ;;  %v178_v51 = vld [vmem:[%s4027_s1 + $0x3e8] sm:$0xff]  ;;  %v2461_v52 = vpack.c.bf16 %v128_v44, %v127_v43  ;;  %v2463_v54 = vpack.c.bf16 %v146_v49, %v145_v48 }
  0x2b   :  { %2478 = vmatpush3.bf16.msra.mxu1 %v2477_v63  ;;  %605 = vmatprep.mubr.f32.mxu1 %v28_v37  ;;  %v2493_v53 = vpack.c.bf16 %v160_v47, %v159_v45  ;;  %v129_v55 = vld [vmem:[%s4027_s1 + $0x260] sm:$0xff]  ;;  %v130_v56 = vld [vmem:[%s4027_s1 + $0x268] sm:$0xff]  ;;  %v2495_v58 = vpack.c.bf16 %v178_v51, %v177_v50  ;;  %v147_v60 = vld [vmem:[%s4027_s1 + $0x2f0] sm:$0xff] }
  0x2c   :  { %2480 = vmatprep.subr.bf16.mxu1 %v2479_v4  ;;  %v161_v57 = vld [vmem:[%s4027_s1 + $0x360] sm:$0xff]  ;;  %v162_v59 = vld [vmem:[%s4027_s1 + $0x368] sm:$0xff]  ;;  %v148_v61 = vld [vmem:[%s4027_s1 + $0x2f8] sm:$0xff]  ;;  %v2465_v0 = vpack.c.bf16 %v130_v56, %v129_v55 }
  0x2d   :  { %2450 = vmatpush3.bf16.msra.mxu0 %v2449_v10  ;;  %v179_v62 = vld [vmem:[%s4027_s1 + $0x3f0] sm:$0xff]  ;;  %v180_v63 = vld [vmem:[%s4027_s1 + $0x3f8] sm:$0xff]  ;;  %v2497_v1 = vpack.c.bf16 %v162_v59, %v161_v57  ;;  %v2467_v2 = vpack.c.bf16 %v148_v61, %v147_v60  ;;  %v197_v8 = vld [vmem:[%s4027_s1 + $0x480] sm:$0xff] }
  0x2e   :  { %2452 = vmatprep.subr.bf16.mxu0 %v2451_v15  ;;  %v131_v3 = vld [vmem:[%s4027_s1 + $0x270] sm:$0xff]  ;;  %v132_v4 = vld [vmem:[%s4027_s1 + $0x278] sm:$0xff]  ;;  %v2499_v6 = vpack.c.bf16 %v180_v63, %v179_v62  ;;  %v198_v9 = vld [vmem:[%s4027_s1 + $0x488] sm:$0xff] }
  0x2f   :  { %2482 = vmatpush3.bf16.msra.mxu1 %v2481_v14  ;;  %v163_v5 = vld [vmem:[%s4027_s1 + $0x370] sm:$0xff]  ;;  %v164_v7 = vld [vmem:[%s4027_s1 + $0x378] sm:$0xff]  ;;  %v229_v10 = vld [vmem:[%s4027_s1 + $0x580] sm:$0xff]  ;;  %v2469_v12 = vpack.c.bf16 %v132_v4, %v131_v3  ;;  %v2503_v14 = vpack.c.bf16 %v198_v9, %v197_v8 }
  0x30   :  { %2484 = vmatprep.subr.bf16.mxu1 %v2483_v19  ;;  %v230_v11 = vld [vmem:[%s4027_s1 + $0x588] sm:$0xff]  ;;  %v2501_v13 = vpack.c.bf16 %v164_v7, %v163_v5  ;;  %v181_v15 = vld [vmem:[%s4027_s1 + $0x400] sm:$0xff]  ;;  %v27_v21 = vld [vmem:[%s4026_s0 + $0x30] sm:$0xff] }
  0x31   :  { %2454 = vmatpush3.bf16.msra.mxu0 %v2453_v25  ;;  %v182_v16 = vld [vmem:[%s4027_s1 + $0x408] sm:$0xff]  ;;  %v25_v17 = vld [vmem:[%s4026_s0 + $0x20] sm:$0xff]  ;;  %v2535_v18 = vpack.c.bf16 %v230_v11, %v229_v10  ;;  %v199_v22 = vld [vmem:[%s4027_s1 + $0x490] sm:$0xff] }
  0x32   :  { %2456 = vmatprep.subr.bf16.mxu0 %v2455_v30  ;;  %v213_v19 = vld [vmem:[%s4027_s1 + $0x500] sm:$0xff]  ;;  %v214_v20 = vld [vmem:[%s4027_s1 + $0x508] sm:$0xff]  ;;  %v200_v23 = vld [vmem:[%s4027_s1 + $0x498] sm:$0xff]  ;;  %v2505_v24 = vpack.c.bf16 %v182_v16, %v181_v15 }
  0x33   :  { %2486 = vmatpush3.bf16.msra.mxu1 %v2485_v29  ;;  %v42_v25 = vld [vmem:[%s4026_s0 + $0xa8] sm:$0xff]  ;;  %v231_v26 = vld [vmem:[%s4027_s1 + $0x590] sm:$0xff]  ;;  %v232_v27 = vld [vmem:[%s4027_s1 + $0x598] sm:$0xff]  ;;  %v2537_v28 = vpack.c.bf16 %v214_v20, %v213_v19  ;;  %v2507_v32 = vpack.c.bf16 %v200_v23, %v199_v22 }
  0x34   :  { %2488 = vmatprep.subr.bf16.mxu1 %v2487_v34  ;;  %v183_v29 = vld [vmem:[%s4027_s1 + $0x410] sm:$0xff]  ;;  %v184_v30 = vld [vmem:[%s4027_s1 + $0x418] sm:$0xff]  ;;  %v201_v34 = vld [vmem:[%s4027_s1 + $0x4a0] sm:$0xff]  ;;  %v2539_v37 = vpack.c.bf16 %v232_v27, %v231_v26 }
  0x35   :  { %2458 = vmatpush3.bf16.msra.mxu0 %v2457_v40  ;;  %v215_v31 = vld [vmem:[%s4027_s1 + $0x510] sm:$0xff]  ;;  %v216_v33 = vld [vmem:[%s4027_s1 + $0x518] sm:$0xff]  ;;  %v202_v35 = vld [vmem:[%s4027_s1 + $0x4a8] sm:$0xff] }
  0x36   :  { %2460 = vmatprep.subr.bf16.mxu0 %v2459_v42  ;;  %v44_v36 = vld [vmem:[%s4026_s0 + $0xb8] sm:$0xff]  ;;  %v233_v38 = vld [vmem:[%s4027_s1 + $0x5a0] sm:$0xff]  ;;  %v234_v39 = vld [vmem:[%s4027_s1 + $0x5a8] sm:$0xff]  ;;  %v2541_v43 = vpack.c.bf16 %v216_v33, %v215_v31  ;;  %v2511_v44 = vpack.c.bf16 %v202_v35, %v201_v34 }
  0x37   :  { %2490 = vmatpush3.bf16.msra.mxu1 %v2489_v41  ;;  %v41_v40 = vld [vmem:[%s4026_s0 + $0xa0] sm:$0xff]  ;;  %v2509_v41 = vpack.c.bf16 %v184_v30, %v183_v29  ;;  %v43_v42 = vld [vmem:[%s4026_s0 + $0xb0] sm:$0xff]  ;;  %v2543_v48 = vpack.c.bf16 %v234_v39, %v233_v38  ;;  %v218_v49 = vld [vmem:[%s4027_s1 + $0x528] sm:$0xff] }
  0x38   :  { %2492 = vmatprep.subr.bf16.mxu1 %v2491_v46  ;;  %v185_v45 = vld [vmem:[%s4027_s1 + $0x420] sm:$0xff]  ;;  %v186_v46 = vld [vmem:[%s4027_s1 + $0x428] sm:$0xff]  ;;  %v203_v50 = vld [vmem:[%s4027_s1 + $0x4b0] sm:$0xff] }
  0x39   :  { %2462 = vmatpush3.bf16.msra.mxu0 %v2461_v52  ;;  %v217_v47 = vld [vmem:[%s4027_s1 + $0x520] sm:$0xff]  ;;  %v204_v51 = vld [vmem:[%s4027_s1 + $0x4b8] sm:$0xff]  ;;  %v235_v52 = vld [vmem:[%s4027_s1 + $0x5b0] sm:$0xff]  ;;  %v2513_v55 = vpack.c.bf16 %v186_v46, %v185_v45 }
  0x3a   :  { %2464 = vmatprep.subr.bf16.mxu0 %v2463_v54  ;;  %v30_v54 = vld [vmem:[%s4026_s0 + $0x48] sm:$0xff]  ;;  %v32_v56 = vld [vmem:[%s4026_s0 + $0x58] sm:$0xff]  ;;  %v2545_v57 = vpack.c.bf16 %v218_v49, %v217_v47  ;;  %v187_v59 = vld [vmem:[%s4027_s1 + $0x430] sm:$0xff] }
  0x3b   :  { %2494 = vmatpush3.bf16.msra.mxu1 %v2493_v53  ;;  %v236_v53 = vld [vmem:[%s4027_s1 + $0x5b8] sm:$0xff]  ;;  %v219_v61 = vld [vmem:[%s4027_s1 + $0x530] sm:$0xff]  ;;  %v238_v3 = vld [vmem:[%s4027_s1 + $0x5c8] sm:$0xff] }
  0x3c   :  { %2496 = vmatprep.subr.bf16.mxu1 %v2495_v58  ;;  %v2515_v58 = vpack.c.bf16 %v204_v51, %v203_v50  ;;  %v188_v60 = vld [vmem:[%s4027_s1 + $0x438] sm:$0xff]  ;;  %v2547_v62 = vpack.c.bf16 %v236_v53, %v235_v52  ;;  %v189_v7 = vld [vmem:[%s4027_s1 + $0x440] sm:$0xff]  ;;  %v190_v8 = vld [vmem:[%s4027_s1 + $0x448] sm:$0xff] }
  0x3d   :  { %2466 = vmatpush3.bf16.msra.mxu0 %v2465_v0  ;;  %v220_v63 = vld [vmem:[%s4027_s1 + $0x538] sm:$0xff]  ;;  %v205_v0 = vld [vmem:[%s4027_s1 + $0x4c0] sm:$0xff]  ;;  %v2517_v4 = vpack.c.bf16 %v188_v60, %v187_v59  ;;  %v222_v11 = vld [vmem:[%s4027_s1 + $0x548] sm:$0xff]  ;;  %v2521_v16 = vpack.c.bf16 %v190_v8, %v189_v7 }
  0x3e   :  { %2468 = vmatprep.subr.bf16.mxu0 %v2467_v2  ;;  %v237_v2 = vld [vmem:[%s4027_s1 + $0x5c0] sm:$0xff]  ;;  %v2549_v5 = vpack.c.bf16 %v220_v63, %v219_v61  ;;  %v240_v15 = vld [vmem:[%s4027_s1 + $0x5d8] sm:$0xff]  ;;  %v191_v19 = vld [vmem:[%s4027_s1 + $0x450] sm:$0xff] }
  0x3f   :  { %2498 = vmatpush3.bf16.msra.mxu1 %v2497_v1  ;;  %v206_v1 = vld [vmem:[%s4027_s1 + $0x4c8] sm:$0xff]  ;;  %v221_v9 = vld [vmem:[%s4027_s1 + $0x540] sm:$0xff]  ;;  %v2551_v10 = vpack.c.bf16 %v238_v3, %v237_v2  ;;  %v192_v20 = vld [vmem:[%s4027_s1 + $0x458] sm:$0xff] }
  0x40   :  { %2500 = vmatprep.subr.bf16.mxu1 %v2499_v6  ;;  %v2519_v6 = vpack.c.bf16 %v206_v1, %v205_v0  ;;  %v224_v23 = vld [vmem:[%s4027_s1 + $0x558] sm:$0xff]  ;;  %v241_v26 = vld [vmem:[%s4027_s1 + $0x5e0] sm:$0xff]  ;;  %v242_v27 = vld [vmem:[%s4027_s1 + $0x5e8] sm:$0xff] }
  0x41   :  { %2470 = vmatpush3.bf16.msra.mxu0 %v2469_v12  ;;  %v207_v12 = vld [vmem:[%s4027_s1 + $0x4d0] sm:$0xff]  ;;  %v193_v31 = vld [vmem:[%s4027_s1 + $0x460] sm:$0xff]  ;;  %v2559_v34 = vpack.c.bf16 %v242_v27, %v241_v26  ;;  %v226_v35 = vld [vmem:[%s4027_s1 + $0x568] sm:$0xff] }
  0x42   :  { %2504 = vmatprep.subr.bf16.mxu0 %v2503_v14  ;;  %v239_v14 = vld [vmem:[%s4027_s1 + $0x5d0] sm:$0xff]  ;;  %v225_v33 = vld [vmem:[%s4027_s1 + $0x560] sm:$0xff]  ;;  %v244_v39 = vld [vmem:[%s4027_s1 + $0x5f8] sm:$0xff] }
  0x43   :  { %2502 = vmatpush3.bf16.msra.mxu1 %v2501_v13  ;;  %v208_v13 = vld [vmem:[%s4027_s1 + $0x4d8] sm:$0xff]  ;;  %v2555_v22 = vpack.c.bf16 %v240_v15, %v239_v14  ;;  %v243_v38 = vld [vmem:[%s4027_s1 + $0x5f0] sm:$0xff]  ;;  %v262_v49 = vld [vmem:[%s4027_s1 + $0x688] sm:$0xff] }
  0x44   :  { %2536 = vmatprep.subr.bf16.mxu1 %v2535_v18  ;;  %531 = vmatmul.mubr.f32.vlgmr.msra.gmra.mrb[4].mxu0 %v25_v17  ;;  %v2553_v17 = vpack.c.bf16 %v222_v11, %v221_v9  ;;  %v2523_v18 = vpack.c.bf16 %v208_v13, %v207_v12  ;;  %v227_v45 = vld [vmem:[%s4027_s1 + $0x570] sm:$0xff]  ;;  %v2563_v46 = vpack.c.bf16 %v244_v39, %v243_v38  ;;  %v228_v47 = vld [vmem:[%s4027_s1 + $0x578] sm:$0xff]  ;;  %v293_v50 = vld [vmem:[%s4027_s1 + $0x780] sm:$0xff] }
  0x45   :  { %2506 = vmatpush3.bf16.msra.mxu0 %v2505_v24  ;;  %535 = vmatprep.mubr.f32.mxu0 %v42_v25  ;;  %v209_v24 = vld [vmem:[%s4027_s1 + $0x4e0] sm:$0xff]  ;;  %v210_v25 = vld [vmem:[%s4027_s1 + $0x4e8] sm:$0xff]  ;;  %v2565_v53 = vpack.c.bf16 %v228_v47, %v227_v45  ;;  %v31_v61 = vld [vmem:[%s4026_s0 + $0x50] sm:$0xff] }
  0x46   :  { %606 = vmatmul.mubr.f32.vlgmr.msra.gmra.mrb[4].mxu1 %v27_v21  ;;  %2508 = vmatprep.subr.bf16.mxu0 %v2507_v32  ;;  %v223_v21 = vld [vmem:[%s4027_s1 + $0x550] sm:$0xff]  ;;  %v2527_v30 = vpack.c.bf16 %v210_v25, %v209_v24  ;;  %v194_v32 = vld [vmem:[%s4027_s1 + $0x468] sm:$0xff]  ;;  %v277_v59 = vld [vmem:[%s4027_s1 + $0x700] sm:$0xff] }
  0x47   :  { %2538 = vmatpush3.bf16.msra.mxu1 %v2537_v28  ;;  %610 = vmatprep.mubr.f32.mxu1 %v44_v36  ;;  %v2525_v28 = vpack.c.bf16 %v192_v20, %v191_v19  ;;  %v2557_v29 = vpack.c.bf16 %v224_v23, %v223_v21  ;;  %v211_v36 = vld [vmem:[%s4027_s1 + $0x4f0] sm:$0xff]  ;;  %v294_v51 = vld [vmem:[%s4027_s1 + $0x788] sm:$0xff]  ;;  %v264_v63 = vld [vmem:[%s4027_s1 + $0x698] sm:$0xff] }
  0x48   :  { %536 = vmatmul.mubr.f32.gmra.mrb[6].mxu0 %v41_v40  ;;  %2540 = vmatprep.subr.bf16.mxu1 %v2539_v37  ;;  %v212_v37 = vld [vmem:[%s4027_s1 + $0x4f8] sm:$0xff]  ;;  %v2529_v40 = vpack.c.bf16 %v194_v32, %v193_v31  ;;  %v278_v60 = vld [vmem:[%s4027_s1 + $0x708] sm:$0xff]  ;;  %v295_v2 = vld [vmem:[%s4027_s1 + $0x790] sm:$0xff] }
  0x49   :  { %2510 = vmatpush3.bf16.msra.mxu0 %v2509_v41  ;;  %680 = vmatprep.mubr.f32.mxu0 %v30_v54  ;;  %v2561_v41 = vpack.c.bf16 %v226_v35, %v225_v33  ;;  %v46_v1 = vld [vmem:[%s4026_s0 + $0xc8] sm:$0xff]  ;;  %v296_v3 = vld [vmem:[%s4027_s1 + $0x798] sm:$0xff] }
  0x4a   :  { %611 = vmatmul.mubr.f32.gmra.mrb[6].mxu1 %v43_v42  ;;  %2512 = vmatprep.subr.bf16.mxu0 %v2511_v44  ;;  %v2531_v42 = vpack.c.bf16 %v212_v37, %v211_v36  ;;  %v196_v44 = vld [vmem:[%s4027_s1 + $0x478] sm:$0xff] }
  0x4b   :  { %2542 = vmatpush3.bf16.msra.mxu1 %v2541_v43  ;;  %755 = vmatprep.mubr.f32.mxu1 %v32_v56  ;;  %v195_v43 = vld [vmem:[%s4027_s1 + $0x470] sm:$0xff]  ;;  %v246_v56 = vld [vmem:[%s4027_s1 + $0x608] sm:$0xff] }
  0x4c   :  { %2544 = vmatprep.subr.bf16.mxu1 %v2543_v48  ;;  %v261_v48 = vld [vmem:[%s4027_s1 + $0x680] sm:$0xff]  ;;  %v2533_v52 = vpack.c.bf16 %v196_v44, %v195_v43 }
  0x4d   :  { %2514 = vmatpush3.bf16.msra.mxu0 %v2513_v55  ;;  %v2567_v54 = vpack.c.bf16 %v262_v49, %v261_v48  ;;  %v245_v55 = vld [vmem:[%s4027_s1 + $0x600] sm:$0xff] }
  0x4e   :  { %2516 = vmatprep.subr.bf16.mxu0 %v2515_v58  ;;  %v2599_v58 = vpack.c.bf16 %v294_v51, %v293_v50  ;;  %v2569_v0 = vpack.c.bf16 %v246_v56, %v245_v55 }
  0x4f   :  { %2546 = vmatpush3.bf16.msra.mxu1 %v2545_v57  ;;  %v29_v57 = vld [vmem:[%s4026_s0 + $0x40] sm:$0xff] }
  0x50   :  { %2548 = vmatprep.subr.bf16.mxu1 %v2547_v62  ;;  %v263_v62 = vld [vmem:[%s4027_s1 + $0x690] sm:$0xff] }
  0x51   :  { %2518 = vmatpush3.bf16.msra.mxu0 %v2517_v4 }
  0x52   :  { %2520 = vmatprep.subr.bf16.mxu0 %v2519_v6 }
  0x53   :  { %2550 = vmatpush3.bf16.msra.mxu1 %v2549_v5 }
  0x54   :  { %2552 = vmatprep.subr.bf16.mxu1 %v2551_v10 }
  0x55   :  { %2522 = vmatpush3.bf16.msra.mxu0 %v2521_v16 }
  0x56   :  { %2524 = vmatprep.subr.bf16.mxu0 %v2523_v18 }
  0x57   :  { %2554 = vmatpush3.bf16.msra.mxu1 %v2553_v17 }
  0x58   :  { %2556 = vmatprep.subr.bf16.mxu1 %v2555_v22 }
  0x59   :  { %2526 = vmatpush3.bf16.msra.mxu0 %v2525_v28 }
  0x5a   :  { %2528 = vmatprep.subr.bf16.mxu0 %v2527_v30 }
  0x5b   :  { %2558 = vmatpush3.bf16.msra.mxu1 %v2557_v29 }
  0x5c   :  { %2560 = vmatprep.subr.bf16.mxu1 %v2559_v34 }
  0x5d   :  { %2530 = vmatpush3.bf16.msra.mxu0 %v2529_v40 }
  0x5e   :  { %2532 = vmatprep.subr.bf16.mxu0 %v2531_v42 }
  0x5f   :  { %2562 = vmatpush3.bf16.msra.mxu1 %v2561_v41 }
  0x60   :  { %2564 = vmatprep.subr.bf16.mxu1 %v2563_v46 }
  0x61   :  { %2534 = vmatpush3.bf16.msra.mxu0 %v2533_v52 }
  0x62   :  { %10 = vsyncpa [#allocation3], 0  ;;  %2568 = vmatprep.subr.bf16.mxu0 %v2567_v54  ;;  %v2601_v4 = vpack.c.bf16 %v278_v60, %v277_v59  ;;  %v247_v5 = vld [vmem:[%s4027_s1 + $0x610] sm:$0xff]  ;;  %v248_v6 = vld [vmem:[%s4027_s1 + $0x618] sm:$0xff]  ;;  %v2571_v8 = vpack.c.bf16 %v264_v63, %v263_v62  ;;  %v2603_v13 = vpack.c.bf16 %v296_v3, %v295_v2  ;;  %vm1085_vm0 = vcmask 1041408   ;;  %s2820_s25 = smov [#allocation2]  }
  0x63   :  { %2566 = vmatpush3.bf16.msra.mxu1 %v2565_v53  ;;  %v279_v7 = vld [vmem:[%s4027_s1 + $0x710] sm:$0xff]  ;;  %v280_v9 = vld [vmem:[%s4027_s1 + $0x718] sm:$0xff]  ;;  %v265_v10 = vld [vmem:[%s4027_s1 + $0x6a0] sm:$0xff]  ;;  %v2573_v17 = vpack.c.bf16 %v248_v6, %v247_v5  ;;  %vm1078_vm1 = vcmask 15360   ;;  %s1995_s26 = sshll.u32 %s2820_s25, 4  ;;  %s1996_s26 = int_to_ptr.vmem [resolvable:$true] %s1995_s26 }
  0x64   :  { %2600 = vmatprep.subr.bf16.mxu1 %v2599_v58  ;;  %v266_v11 = vld [vmem:[%s4027_s1 + $0x6a8] sm:$0xff]  ;;  %681 = vmatmul.mubr.f32.vlgmr.msra.gmra.mrb[8].mxu0 %v29_v57  ;;  %v48_v12 = vld [vmem:[%s4026_s0 + $0xd8] sm:$0xff]  ;;  %v297_v14 = vld [vmem:[%s4027_s1 + $0x7a0] sm:$0xff]  ;;  %v2605_v19 = vpack.c.bf16 %v280_v9, %v279_v7  ;;  %p2799_p1 = scmp.lt.s32.totalorder %s1996_s26, %s1996_s26 }
  0x65   :  { %v298_v15 = vld [vmem:[%s4027_s1 + $0x7a8] sm:$0xff]  ;;  %2570 = vmatpush3.bf16.msra.mxu0 %v2569_v0  ;;  %v45_v16 = vld [vmem:[%s4026_s0 + $0xc0] sm:$0xff]  ;;  %v47_v18 = vld [vmem:[%s4026_s0 + $0xd0] sm:$0xff]  ;;  %685 = vmatprep.mubr.f32.mxu0 %v46_v1  ;;  %v2575_v20 = vpack.c.bf16 %v266_v11, %v265_v10 }
  0x66   :  { %756 = vmatmul.mubr.f32.vlgmr.msra.gmra.mrb[8].mxu1 %v31_v61  ;;  %v249_v21 = vld [vmem:[%s4027_s1 + $0x620] sm:$0xff]  ;;  %v250_v22 = vld [vmem:[%s4027_s1 + $0x628] sm:$0xff]  ;;  %2572 = vmatprep.subr.bf16.mxu0 %v2571_v8  ;;  %v2607_v24 = vpack.c.bf16 %v298_v15, %v297_v14  ;;  %v267_v26 = vld [vmem:[%s4027_s1 + $0x6b0] sm:$0xff] }
  0x67   :  { %2602 = vmatpush3.bf16.msra.mxu1 %v2601_v4  ;;  %v281_v23 = vld [vmem:[%s4027_s1 + $0x720] sm:$0xff]  ;;  %760 = vmatprep.mubr.f32.mxu1 %v48_v12  ;;  %v282_v25 = vld [vmem:[%s4027_s1 + $0x728] sm:$0xff]  ;;  %v268_v27 = vld [vmem:[%s4027_s1 + $0x6b8] sm:$0xff]  ;;  %v2577_v31 = vpack.c.bf16 %v250_v22, %v249_v21 }
  0x68   :  { %686 = vmatmul.mubr.f32.gmra.mrb[10].mxu0 %v45_v16  ;;  %2604 = vmatprep.subr.bf16.mxu1 %v2603_v13  ;;  %v299_v28 = vld [vmem:[%s4027_s1 + $0x7b0] sm:$0xff]  ;;  %v300_v29 = vld [vmem:[%s4027_s1 + $0x7b8] sm:$0xff]  ;;  %v34_v30 = vld [vmem:[%s4026_s0 + $0x68] sm:$0xff]  ;;  %v2609_v33 = vpack.c.bf16 %v282_v25, %v281_v23  ;;  %v2579_v34 = vpack.c.bf16 %v268_v27, %v267_v26 }
  0x69   :  { %2574 = vmatpush3.bf16.msra.mxu0 %v2573_v17  ;;  %v36_v32 = vld [vmem:[%s4026_s0 + $0x78] sm:$0xff]  ;;  %v251_v35 = vld [vmem:[%s4027_s1 + $0x630] sm:$0xff]  ;;  %v2611_v38 = vpack.c.bf16 %v300_v29, %v299_v28  ;;  %v269_v40 = vld [vmem:[%s4027_s1 + $0x6c0] sm:$0xff]  ;;  %830 = vmatprep.mubr.f32.mxu0 %v34_v30 }
  0x6a   :  { %761 = vmatmul.mubr.f32.gmra.mrb[10].mxu1 %v47_v18  ;;  %2576 = vmatprep.subr.bf16.mxu0 %v2575_v20  ;;  %v252_v36 = vld [vmem:[%s4027_s1 + $0x638] sm:$0xff]  ;;  %v283_v37 = vld [vmem:[%s4027_s1 + $0x730] sm:$0xff]  ;;  %v270_v41 = vld [vmem:[%s4027_s1 + $0x6c8] sm:$0xff] }
  0x6b   :  { %2606 = vmatpush3.bf16.msra.mxu1 %v2605_v19  ;;  %v284_v39 = vld [vmem:[%s4027_s1 + $0x738] sm:$0xff]  ;;  %v301_v42 = vld [vmem:[%s4027_s1 + $0x7c0] sm:$0xff]  ;;  %v302_v43 = vld [vmem:[%s4027_s1 + $0x7c8] sm:$0xff]  ;;  %905 = vmatprep.mubr.f32.mxu1 %v36_v32  ;;  %v2581_v44 = vpack.c.bf16 %v252_v36, %v251_v35  ;;  %v2583_v46 = vpack.c.bf16 %v270_v41, %v269_v40  ;;  %v926_v32 = vlaneseq }
  0x6c   :  { %2608 = vmatprep.subr.bf16.mxu1 %v2607_v24  ;;  %v2613_v45 = vpack.c.bf16 %v284_v39, %v283_v37  ;;  %v253_v47 = vld [vmem:[%s4027_s1 + $0x640] sm:$0xff]  ;;  %v254_v48 = vld [vmem:[%s4027_s1 + $0x648] sm:$0xff]  ;;  %v2615_v50 = vpack.c.bf16 %v302_v43, %v301_v42  ;;  %v271_v52 = vld [vmem:[%s4027_s1 + $0x6d0] sm:$0xff] }
  0x6d   :  { %2578 = vmatpush3.bf16.msra.mxu0 %v2577_v31  ;;  %v285_v49 = vld [vmem:[%s4027_s1 + $0x740] sm:$0xff]  ;;  %v286_v51 = vld [vmem:[%s4027_s1 + $0x748] sm:$0xff]  ;;  %v272_v53 = vld [vmem:[%s4027_s1 + $0x6d8] sm:$0xff]  ;;  %v2585_v56 = vpack.c.bf16 %v254_v48, %v253_v47  ;;  %v3735_v35 = vshrl.u32 %v926_v32, 7 }
  0x6e   :  { %2580 = vmatprep.subr.bf16.mxu0 %v2579_v34  ;;  %v303_v54 = vld [vmem:[%s4027_s1 + $0x7d0] sm:$0xff]  ;;  %v304_v55 = vld [vmem:[%s4027_s1 + $0x7d8] sm:$0xff]  ;;  %v2617_v57 = vpack.c.bf16 %v286_v51, %v285_v49  ;;  %v2587_v58 = vpack.c.bf16 %v272_v53, %v271_v52  ;;  %v273_v0 = vld [vmem:[%s4027_s1 + $0x6e0] sm:$0xff] }
  0x6f   :  { %2610 = vmatpush3.bf16.msra.mxu1 %v2609_v33  ;;  %v255_v59 = vld [vmem:[%s4027_s1 + $0x650] sm:$0xff]  ;;  %v256_v60 = vld [vmem:[%s4027_s1 + $0x658] sm:$0xff]  ;;  %v2619_v62 = vpack.c.bf16 %v304_v55, %v303_v54  ;;  %v274_v1 = vld [vmem:[%s4027_s1 + $0x6e8] sm:$0xff]  ;;  %v2818_v33 = vmov 1983009808  }
  0x70   :  { %2612 = vmatprep.subr.bf16.mxu1 %v2611_v38  ;;  %v287_v61 = vld [vmem:[%s4027_s1 + $0x750] sm:$0xff]  ;;  %v288_v63 = vld [vmem:[%s4027_s1 + $0x758] sm:$0xff]  ;;  %v305_v2 = vld [vmem:[%s4027_s1 + $0x7e0] sm:$0xff]  ;;  %v2589_v4 = vpack.c.bf16 %v256_v60, %v255_v59  ;;  %v2591_v6 = vpack.c.bf16 %v274_v1, %v273_v0  ;;  %v1012_v34 = vunpack.c.l.s4 %v2818_v33 }
  0x71   :  { %2582 = vmatpush3.bf16.msra.mxu0 %v2581_v44  ;;  %v306_v3 = vld [vmem:[%s4027_s1 + $0x7e8] sm:$0xff]  ;;  %v2621_v5 = vpack.c.bf16 %v288_v63, %v287_v61  ;;  %v257_v7 = vld [vmem:[%s4027_s1 + $0x660] sm:$0xff]  ;;  %v275_v12 = vld [vmem:[%s4027_s1 + $0x6f0] sm:$0xff] }
  0x72   :  { %2584 = vmatprep.subr.bf16.mxu0 %v2583_v46  ;;  %v258_v8 = vld [vmem:[%s4027_s1 + $0x668] sm:$0xff]  ;;  %v289_v9 = vld [vmem:[%s4027_s1 + $0x760] sm:$0xff]  ;;  %v2623_v10 = vpack.c.bf16 %v306_v3, %v305_v2  ;;  %v276_v13 = vld [vmem:[%s4027_s1 + $0x6f8] sm:$0xff]  ;;  %v1013_v36 = vunpack.c.0.s8 %v1012_v34 }
  0x73   :  { %2614 = vmatpush3.bf16.msra.mxu1 %v2613_v45  ;;  %v290_v11 = vld [vmem:[%s4027_s1 + $0x768] sm:$0xff]  ;;  %v307_v14 = vld [vmem:[%s4027_s1 + $0x7f0] sm:$0xff]  ;;  %v308_v15 = vld [vmem:[%s4027_s1 + $0x7f8] sm:$0xff]  ;;  %v2593_v16 = vpack.c.bf16 %v258_v8, %v257_v7  ;;  %v2595_v18 = vpack.c.bf16 %v276_v13, %v275_v12  ;;  %v2819_v45 = vmov 0.0  }
  0x74   :  { %2616 = vmatprep.subr.bf16.mxu1 %v2615_v50  ;;  %v2625_v17 = vpack.c.bf16 %v290_v11, %v289_v9  ;;  %v259_v19 = vld [vmem:[%s4027_s1 + $0x670] sm:$0xff]  ;;  %v260_v20 = vld [vmem:[%s4027_s1 + $0x678] sm:$0xff]  ;;  %v2627_v21 = vpack.c.bf16 %v308_v15, %v307_v14  ;;  %v3702_v26 = vld [vmem:[%s4026_s0 + $0x60] sm:$0xff]  ;;  %v3741_v38 = vsub.s32 %v1013_v36, %v3735_v35 }
  0x75   :  { %2586 = vmatpush3.bf16.msra.mxu0 %v2585_v56  ;;  %v291_v22 = vld [vmem:[%s4027_s1 + $0x770] sm:$0xff]  ;;  %v292_v23 = vld [vmem:[%s4027_s1 + $0x778] sm:$0xff]  ;;  %v2597_v24 = vpack.c.bf16 %v260_v20, %v259_v19  ;;  %v3712_v28 = vld [vmem:[%s4026_s0 + $0xe8] sm:$0xff] }
  0x76   :  { %2588 = vmatprep.subr.bf16.mxu0 %v2587_v58  ;;  %v2629_v25 = vpack.c.bf16 %v292_v23, %v291_v22  ;;  %v3707_v27 = vld [vmem:[%s4026_s0 + $0x70] sm:$0xff]  ;;  %v3717_v29 = vld [vmem:[%s4026_s0 + $0xf8] sm:$0xff]  ;;  %v3725_v30 = vld [vmem:[%s4026_s0 + $0xe0] sm:$0xff] }
  0x77   :  { %2618 = vmatpush3.bf16.msra.mxu1 %v2617_v57  ;;  %v3731_v31 = vld [vmem:[%s4026_s0 + $0xf0] sm:$0xff]  ;;  %v918_v37 = vld [vmem:[%s4029_s3] sm:$0xff]  ;;  %v919_v44 = vld [vmem:[%s4029_s3 + $0x8] sm:$0xff] }
  0x78   :  { %2620 = vmatprep.subr.bf16.mxu1 %v2619_v62  ;;  %v1010_v39 = vcombine.high %v918_v37, %v918_v37  ;;  %v1017_v40 = vrot.slane %v918_v37, %v3741_v38  ;;  %v1027_v46 = vcombine.high %v919_v44, %v919_v44  ;;  %v3755_v47 = vrot.slane %v919_v44, %v3741_v38  ;;  %v2006_v52 = vld [vmem:[%s4028_s2] ss:$0 sm:$0xff]  ;;  %v920_v44 = vld [vmem:[%s4029_s3 + $0x10] sm:$0xff] }
  0x79   :  { %2590 = vmatpush3.bf16.msra.mxu0 %v2589_v4 }
  0x7a   :  { %2592 = vmatprep.subr.bf16.mxu0 %v2591_v6  ;;  %v1024_v41 = vrot.slane %v1010_v39, %v3741_v38  ;;  %v1025_v42 = vcombine.high %v1017_v40, %v1017_v40  ;;  %v3758_v48 = vrot.slane %v1027_v46, %v3741_v38  ;;  %v1042_v49 = vcombine.high %v3755_v47, %v3755_v47 }
  0x7b   :  { %2622 = vmatpush3.bf16.msra.mxu1 %v2621_v5 }
  0x7c   :  { %2624 = vmatprep.subr.bf16.mxu1 %v2623_v10  ;;  %v1026_v43 = vcombine.high %v1024_v41, %v1024_v41  ;;  %v1043_v50 = vcombine.high %v3758_v48, %v3758_v48 }
  0x7d   :  { %2594 = vmatpush3.bf16.msra.mxu0 %v2593_v16 }
  0x7e   :  { %2596 = vmatprep.subr.bf16.mxu0 %v2595_v18 }
  0x7f   :  { %2626 = vmatpush3.bf16.msra.mxu1 %v2625_v17 }
  0x80   :  { %2628 = vmatprep.subr.bf16.mxu1 %v2627_v21 }
  0x81   :  { %2598 = vmatpush3.bf16.msra.mxu0 %v2597_v24 }
  0x82   :  { %2007 = vmatprep.subr.msk.mxu0 %vm1085_vm0, %v1025_v42 }
  0x83   :  { %2630 = vmatpush3.bf16.msra.mxu1 %v2629_v25 }
  0x84   :  { %831 = vmatmul.mubr.f32.vlgmr.msra.gmra.mrb[12].mxu0 %v3702_v26  ;;  %2011 = vmatprep.subr.msk.mxu1 %vm1085_vm0, %v1026_v43 }
  0x85   :  { %835 = vmatprep.mubr.f32.mxu0 %v3712_v28  ;;  %2008 = vmatpush1.msk.msra.mxu0 %vm1085_vm0, %v1017_v40 }
  0x86   :  { %906 = vmatmul.mubr.f32.vlgmr.msra.gmra.mrb[12].mxu1 %v3707_v27  ;;  %2015 = vmatprep.subr.msk.mxu0 %vm1085_vm0, %v1042_v49 }
  0x87   :  { %910 = vmatprep.mubr.f32.mxu1 %v3717_v29  ;;  %2012 = vmatpush1.msk.msra.mxu1 %vm1085_vm0, %v1024_v41 }
  0x88   :  { %836 = vmatmul.mubr.f32.gmra.mrb[14].mxu0 %v3725_v30  ;;  %2019 = vmatprep.subr.msk.mxu1 %vm1085_vm0, %v1043_v50 }
  0x89   :  { %1182 = vmatprep.mubr.f32.mxu0 %v2819_v45 }
  0x8a   :  { %911 = vmatmul.mubr.f32.gmra.mrb[14].mxu1 %v3731_v31 }
  0x8b   :  { %1259 = vmatprep.mubr.f32.mxu1 %v2819_v45 }
  0xf7   :  { %v2103_v51 = vpop.f32.mrb[0].mxu0 }
  0xf8   :  { %v2104_v53 = vpop.f32.mrb[1].mxu0 }
  0xf9   :  { %v2141_v54 = vpop.f32.mrb[0].mxu1  ;;  %v2105_v55 = vadd.f32 %v2104_v53, %v2103_v51  ;;  %v1044_v51 = vcombine.high %v920_v44, %v920_v44 }
  0xfa   :  { %v2142_v56 = vpop.f32.mrb[1].mxu1 }
  0xfb   :  { %v2143_v57 = vadd.f32 %v2142_v56, %v2141_v54  ;;  %v383_v58 = vadd.f32 %v2105_v55, %v2006_v52  ;;  %v2106_v60 = vpop.f32.mrb[2].mxu0 }
  0xfc   :  { %v2107_v61 = vpop.f32.mrb[3].mxu0 }
  0xfd   :  { %v458_v59 = vadd.f32 %v2143_v57, %v383_v58  ;;  %v2108_v62 = vadd.f32 %v2107_v61, %v2106_v60  ;;  %v2144_v63 = vpop.f32.mrb[2].mxu1  ;;  %v1058_v60 = vrot.slane %v1044_v51, %v3741_v38 }
  0xfe   :  { %v2145_v1 = vpop.f32.mrb[3].mxu1 }
  0xff   :  { %v388_v0 = vadd.f32 %v2108_v62, %v2006_v52  ;;  %v2146_v2 = vadd.f32 %v2145_v1, %v2144_v63 }
 0x101   :  { %v463_v3 = vadd.f32 %v2146_v2, %v388_v0  ;;  %v921_v0 = vld [vmem:[%s4029_s3 + $0x18] sm:$0xff] }
 0x117   :  { %v2179_v4 = vpop.f32.mrb[4].mxu0 }
 0x118   :  { %v2180_v5 = vpop.f32.mrb[5].mxu0 }
 0x119   :  { %v2217_v6 = vpop.f32.mrb[4].mxu1  ;;  %v2181_v7 = vadd.f32 %v2180_v5, %v2179_v4  ;;  %v1060_v5 = vcombine.high %v1058_v60, %v1058_v60 }
 0x11a   :  { %v2218_v8 = vpop.f32.mrb[5].mxu1 }
 0x11b   :  { %v2219_v9 = vadd.f32 %v2218_v8, %v2217_v6  ;;  %v533_v10 = vadd.f32 %v2181_v7, %v458_v59  ;;  %v2182_v11 = vpop.f32.mrb[6].mxu0  ;;  %v1051_v59 = vrot.slane %v920_v44, %v3741_v38  ;;  %v1061_v6 = vcombine.high %v921_v0, %v921_v0 }
 0x11c   :  { %v2183_v12 = vpop.f32.mrb[7].mxu0 }
 0x11d   :  { %v2220_v13 = vpop.f32.mrb[6].mxu1  ;;  %v608_v14 = vadd.f32 %v2219_v9, %v533_v10  ;;  %v2184_v15 = vadd.f32 %v2183_v12, %v2182_v11  ;;  %v1059_v4 = vcombine.high %v1051_v59, %v1051_v59  ;;  %v1068_v9 = vrot.slane %v921_v0, %v3741_v38  ;;  %v922_v12 = vld [vmem:[%s4030_s4] sm:$0xff] }
 0x11e   :  { %v2221_v16 = vpop.f32.mrb[7].mxu1  ;;  %v1075_v10 = vrot.slane %v1061_v6, %v3741_v38  ;;  %v928_v38 = vsub.s32 0, %v3735_v35  ;;  %v936_v11 = vsub.s32 2, %v3735_v35 }
 0x11f   :  { %v2222_v17 = vadd.f32 %v2221_v16, %v2220_v13  ;;  %v538_v18 = vadd.f32 %v2184_v15, %v463_v3  ;;  %v932_v13 = vsub.s32 1, %v3735_v35 }
 0x120   :  { %v929_v15 = vrot.slane %v922_v12, %v928_v38 }
 0x121   :  { %v613_v19 = vadd.f32 %v2222_v17, %v538_v18  ;;  %v933_v16 = vrot.slane %v922_v12, %v932_v13 }
 0x137   :  { %v2255_v20 = vpop.f32.mrb[8].mxu0 }
 0x138   :  { %v2256_v21 = vpop.f32.mrb[9].mxu0 }
 0x139   :  { %v2293_v22 = vpop.f32.mrb[8].mxu1  ;;  %v2257_v23 = vadd.f32 %v2256_v21, %v2255_v20  ;;  %v944_v20 = vsub.s32 4, %v3735_v35  ;;  %v952_v21 = vsub.s32 6, %v3735_v35 }
 0x13a   :  { %v2294_v24 = vpop.f32.mrb[9].mxu1 }
 0x13b   :  { %v2295_v25 = vadd.f32 %v2294_v24, %v2293_v22  ;;  %v683_v32 = vadd.f32 %v2257_v23, %v608_v14  ;;  %v2258_v33 = vpop.f32.mrb[10].mxu0  ;;  %v940_v14 = vsub.s32 3, %v3735_v35  ;;  %v945_v44 = vrot.slane %v922_v12, %v944_v20 }
 0x13c   :  { %v2259_v34 = vpop.f32.mrb[11].mxu0 }
 0x13d   :  { %v2296_v36 = vpop.f32.mrb[10].mxu1  ;;  %v758_v37 = vadd.f32 %v2295_v25, %v683_v32  ;;  %v2260_v39 = vadd.f32 %v2259_v34, %v2258_v33  ;;  %v941_v17 = vrot.slane %v922_v12, %v940_v14  ;;  %v948_v32 = vsub.s32 5, %v3735_v35 }
 0x13e   :  { %v2297_v40 = vpop.f32.mrb[11].mxu1 }
 0x13f   :  { %v2298_v41 = vadd.f32 %v2297_v40, %v2296_v36  ;;  %v688_v42 = vadd.f32 %v2260_v39, %v613_v19  ;;  %v956_v36 = vsub.s32 7, %v3735_v35 }
 0x141   :  { %v763_v43 = vadd.f32 %v2298_v41, %v688_v42 }
 0x157   :  { %v2331_v46 = vpop.f32.mrb[12].mxu0 }
 0x158   :  { %v2332_v49 = vpop.f32.mrb[13].mxu0 }
 0x159   :  { %v2369_v50 = vpop.f32.mrb[12].mxu1  ;;  %v2333_v52 = vadd.f32 %v2332_v49, %v2331_v46  ;;  %v3844_v46 = vrot.slane %v922_v12, %v952_v21 }
 0x15a   :  { %v2370_v53 = vpop.f32.mrb[13].mxu1 }
 0x15b   :  { %v2371_v54 = vadd.f32 %v2370_v53, %v2369_v50  ;;  %v833_v55 = vadd.f32 %v2333_v52, %v758_v37  ;;  %v2334_v56 = vpop.f32.mrb[14].mxu0  ;;  %v3848_v53 = vrot.slane %v922_v12, %v948_v32 }
 0x15c   :  { %v2335_v57 = vpop.f32.mrb[15].mxu0 }
 0x15d   :  { %v2372_v58 = vpop.f32.mrb[14].mxu1  ;;  %v908_v61 = vadd.f32 %v2371_v54, %v833_v55  ;;  %v2336_v62 = vadd.f32 %v2335_v57, %v2334_v56  ;;  %v3852_v56 = vrot.slane %v922_v12, %v956_v36 }
 0x15e   :  { %v2373_v63 = vpop.f32.mrb[15].mxu1 }
 0x15f   :  { %v2374_v1 = vadd.f32 %v2373_v63, %v2372_v58  ;;  %v916_v2 = vmax.f32 %v908_v61, 0.0  ;;  %v838_v3 = vadd.f32 %v2336_v62, %v763_v43 }
 0x161   :  { %v913_v7 = vadd.f32 %v2374_v1, %v838_v3  ;;  %2009 = vmatmul.mubr.msk.f32.vlgmr.msra.gmra.mrb[16].mxu0 %vm1078_vm1, %v916_v2  ;;  %2013 = vmatmul.mubr.msk.f32.vlgmr.msra.gmra.mrb[16].mxu1 %vm1078_vm1, %v916_v2 }
 0x162   :  { %2016 = vmatpush1.msk.msra.mxu0 %vm1085_vm0, %v3755_v47  ;;  %2020 = vmatpush1.msk.msra.mxu1 %vm1085_vm0, %v3758_v48  ;;  %v1076_v47 = vcombine.high %v1068_v9, %v1068_v9  ;;  %v1077_v48 = vcombine.high %v1075_v10, %v1075_v10 }
 0x163   :  { %v917_v8 = vmax.f32 %v913_v7, 0.0  ;;  %1188 = vmatprep.mubr.f32.mxu0 %v2819_v45  ;;  %1265 = vmatprep.mubr.f32.mxu1 %v2819_v45 }
 0x164   :  { %2023 = vmatprep.subr.msk.mxu0 %vm1085_vm0, %v1059_v4  ;;  %2027 = vmatprep.subr.msk.mxu1 %vm1085_vm0, %v1060_v5 }
 0x165   :  { %2010 = vmatmul.mubr.msk.f32.gmra.mrb[18].mxu0 %vm1078_vm1, %v917_v8  ;;  %2014 = vmatmul.mubr.msk.f32.gmra.mrb[18].mxu1 %vm1078_vm1, %v917_v8 }
 0x166   :  { %1336 = vmatprep.mubr.f32.mxu0 %v2819_v45  ;;  %1413 = vmatprep.mubr.f32.mxu1 %v2819_v45 }
 0x169   :  { %2017 = vmatmul.mubr.msk.f32.vlgmr.msra.gmra.mrb[20].mxu0 %vm1078_vm1, %v916_v2  ;;  %2021 = vmatmul.mubr.msk.f32.vlgmr.msra.gmra.mrb[20].mxu1 %vm1078_vm1, %v916_v2 }
 0x16a   :  { %2024 = vmatpush1.msk.msra.mxu0 %vm1085_vm0, %v1051_v59  ;;  %2028 = vmatpush1.msk.msra.mxu1 %vm1085_vm0, %v1058_v60 }
 0x16b   :  { %1342 = vmatprep.mubr.f32.mxu0 %v2819_v45  ;;  %1419 = vmatprep.mubr.f32.mxu1 %v2819_v45 }
 0x16c   :  { %2031 = vmatprep.subr.msk.mxu0 %vm1085_vm0, %v1076_v47  ;;  %2035 = vmatprep.subr.msk.mxu1 %vm1085_vm0, %v1077_v48 }
 0x16d   :  { %2018 = vmatmul.mubr.msk.f32.gmra.mrb[22].mxu0 %vm1078_vm1, %v917_v8  ;;  %2022 = vmatmul.mubr.msk.f32.gmra.mrb[22].mxu1 %vm1078_vm1, %v917_v8 }
 0x16e   :  { %1490 = vmatprep.mubr.f32.mxu0 %v2819_v45  ;;  %1567 = vmatprep.mubr.f32.mxu1 %v2819_v45 }
 0x171   :  { %2025 = vmatmul.mubr.msk.f32.vlgmr.msra.gmra.mrb[24].mxu0 %vm1078_vm1, %v916_v2  ;;  %2029 = vmatmul.mubr.msk.f32.vlgmr.msra.gmra.mrb[24].mxu1 %vm1078_vm1, %v916_v2 }
 0x172   :  { %2032 = vmatpush1.msk.msra.mxu0 %vm1085_vm0, %v1068_v9  ;;  %2036 = vmatpush1.msk.msra.mxu1 %vm1085_vm0, %v1075_v10 }
 0x173   :  { %1496 = vmatprep.mubr.f32.mxu0 %v2819_v45  ;;  %1573 = vmatprep.mubr.f32.mxu1 %v2819_v45 }
 0x175   :  { %2026 = vmatmul.mubr.msk.f32.gmra.mrb[26].mxu0 %vm1078_vm1, %v917_v8  ;;  %2030 = vmatmul.mubr.msk.f32.gmra.mrb[26].mxu1 %vm1078_vm1, %v917_v8 }
 0x176   :  { %1644 = vmatprep.mubr.f32.mxu0 %v2819_v45  ;;  %1721 = vmatprep.mubr.f32.mxu1 %v2819_v45 }
 0x179   :  { %2033 = vmatmul.mubr.msk.f32.vlgmr.msra.gmra.mrb[28].mxu0 %vm1078_vm1, %v916_v2  ;;  %2037 = vmatmul.mubr.msk.f32.vlgmr.msra.gmra.mrb[28].mxu1 %vm1078_vm1, %v916_v2 }
 0x17a   :  { %1650 = vmatprep.mubr.f32.mxu0 %v2819_v45  ;;  %1727 = vmatprep.mubr.f32.mxu1 %v2819_v45  ;;  %v937_v45 = vrot.slane %v922_v12, %v936_v11 }
 0x17d   :  { %2034 = vmatmul.mubr.msk.f32.gmra.mrb[30].mxu0 %vm1078_vm1, %v917_v8  ;;  %2038 = vmatmul.mubr.msk.f32.gmra.mrb[30].mxu1 %vm1078_vm1, %v917_v8 }
 0x234   :  { %v1184_v18 = vpop.f32.mrb[16].mxu0  ;;  %v1261_v19 = vpop.f32.mrb[16].mxu1 }
 0x235   :  { %v1185_v22 = vadd.f32 %v1184_v18, %v929_v15  ;;  %v1262_v23 = vadd.f32 %v1261_v19, %v937_v45  ;;  %v1186_v24 = vpop.f32.mrb[17].mxu0  ;;  %v1263_v25 = vpop.f32.mrb[17].mxu1 }
 0x236   :  { %v1187_v33 = vadd.f32 %v1186_v24, %v933_v16  ;;  %v1264_v34 = vadd.f32 %v1263_v25, %v941_v17 }
 0x237   :  { %v2039_v37 = vmul.f32 -1.442695, %v1185_v22  ;;  %v2041_v39 = vmul.f32 -1.442695, %v1262_v23 }
 0x238   :  { %v2040_v40 = vmul.f32 -1.442695, %v1187_v33  ;;  %v2042_v41 = vmul.f32 -1.442695, %v1264_v34  ;;  %v1190_v42 = vpop.f32.mrb[18].mxu0  ;;  %v1267_v43 = vpop.f32.mrb[18].mxu1 }
 0x239   :  { %2640 = vpow2.f32 %v2039_v37  ;;  %v1191_v49 = vadd.f32 %v1190_v42, %v929_v15  ;;  %v1268_v50 = vadd.f32 %v1267_v43, %v937_v45  ;;  %v1192_v51 = vpop.f32.mrb[19].mxu0  ;;  %v1269_v52 = vpop.f32.mrb[19].mxu1 }
 0x23a   :  { %2642 = vpow2.f32 %v2041_v39  ;;  %v1193_v54 = vadd.f32 %v1192_v51, %v933_v16  ;;  %v1270_v55 = vadd.f32 %v1269_v52, %v941_v17 }
 0x23b   :  { %2644 = vpow2.f32 %v2040_v40  ;;  %v2055_v57 = vmul.f32 -1.442695, %v1191_v49  ;;  %v2057_v58 = vmul.f32 -1.442695, %v1268_v50  ;;  %v3860_v40 = vld [vmem:[%s4030_s4 + $0x8] sm:$0xff] }
 0x23c   :  { %2646 = vpow2.f32 %v2042_v41  ;;  %v2056_v59 = vmul.f32 -1.442695, %v1193_v54  ;;  %v2058_v60 = vmul.f32 -1.442695, %v1270_v55  ;;  %v1338_v61 = vpop.f32.mrb[20].mxu0  ;;  %v1415_v62 = vpop.f32.mrb[20].mxu1  ;;  %v961_v55 = vrot.slane %v3860_v40, %v928_v38 }
 0x23d   :  { %2648 = vpow2.f32 %v2055_v57  ;;  %v1339_v63 = vadd.f32 %v1338_v61, %v945_v44  ;;  %v1416_v0 = vadd.f32 %v1415_v62, %v3844_v46  ;;  %v1340_v1 = vpop.f32.mrb[21].mxu0  ;;  %v1417_v2 = vpop.f32.mrb[21].mxu1  ;;  %v969_v57 = vrot.slane %v3860_v40, %v936_v11 }
 0x23e   :  { %2650 = vpow2.f32 %v2057_v58  ;;  %v1341_v3 = vadd.f32 %v1340_v1, %v3848_v53  ;;  %v1418_v4 = vadd.f32 %v1417_v2, %v3852_v56  ;;  %v965_v62 = vrot.slane %v3860_v40, %v932_v13 }
 0x23f   :  { %2652 = vpow2.f32 %v2056_v59  ;;  %v2043_v5 = vmul.f32 -1.442695, %v1339_v63  ;;  %v2045_v6 = vmul.f32 -1.442695, %v1416_v0  ;;  %v973_v11 = vrot.slane %v3860_v40, %v940_v14 }
 0x240   :  { %2654 = vpow2.f32 %v2058_v60  ;;  %v2044_v7 = vmul.f32 -1.442695, %v1341_v3  ;;  %v2046_v8 = vmul.f32 -1.442695, %v1418_v4  ;;  %v1344_v9 = vpop.f32.mrb[22].mxu0  ;;  %v1421_v10 = vpop.f32.mrb[22].mxu1  ;;  %v3888_v13 = vrot.slane %v3860_v40, %v944_v20 }
 0x241   :  { %2656 = vpow2.f32 %v2043_v5  ;;  %v1345_v47 = vadd.f32 %v1344_v9, %v945_v44  ;;  %v1346_v48 = vpop.f32.mrb[23].mxu0  ;;  %v1423_v12 = vpop.f32.mrb[23].mxu1  ;;  %v1422_v61 = vadd.f32 %v1421_v10, %v3844_v46 }
 0x242   :  { %2658 = vpow2.f32 %v2045_v6  ;;  %v1347_v38 = vadd.f32 %v1346_v48, %v3848_v53  ;;  %v1424_v46 = vadd.f32 %v1423_v12, %v3852_v56 }
 0x243   :  { %v2641_v15 = vpop.eup %2640  ;;  %2660 = vpow2.f32 %v2044_v7  ;;  %v2059_v45 = vmul.f32 -1.442695, %v1345_v47  ;;  %v3897_v7 = vrot.slane %v3860_v40, %v952_v21  ;;  %v2061_v20 = vmul.f32 -1.442695, %v1422_v61  ;;  %v2768_v21 = vld [vmem:[%s4026_s0] sm:$0xff] }
 0x244   :  { %v2643_v16 = vpop.eup %2642  ;;  %v1830_v17 = vadd.f32 1.0, %v2641_v15  ;;  %2662 = vpow2.f32 %v2046_v8  ;;  %v1492_v18 = vpop.f32.mrb[24].mxu0  ;;  %v2060_v12 = vmul.f32 -1.442695, %v1347_v38 }
 0x245   :  { %v2645_v19 = vpop.eup %2644  ;;  %v1832_v22 = vadd.f32 1.0, %v2643_v16  ;;  %2664 = vpow2.f32 %v2059_v45  ;;  %v1569_v23 = vpop.f32.mrb[24].mxu1  ;;  %v1493_v14 = vadd.f32 %v1492_v18, %v961_v55  ;;  %v2062_v18 = vmul.f32 -1.442695, %v1424_v46 }
 0x246   :  { %v1494_v24 = vpop.f32.mrb[25].mxu0  ;;  %v2647_v25 = vpop.eup %2646  ;;  %2666 = vrcp.f32 %v1830_v17  ;;  %v1831_v33 = vadd.f32 1.0, %v2645_v19  ;;  %v1570_v10 = vadd.f32 %v1569_v23, %v969_v57 }
 0x247   :  { %v1571_v34 = vpop.f32.mrb[25].mxu1  ;;  %v2649_v37 = vpop.eup %2648  ;;  %2668 = vrcp.f32 %v1832_v22  ;;  %v1833_v39 = vadd.f32 1.0, %v2647_v25  ;;  %v1495_v15 = vadd.f32 %v1494_v24, %v965_v62  ;;  %v2769_v24 = vld [vmem:[%s4026_s0 + $0x10] sm:$0xff] }
 0x248   :  { %v2651_v41 = vpop.eup %2650  ;;  %2670 = vrcp.f32 %v1831_v33  ;;  %v1846_v42 = vadd.f32 1.0, %v2649_v37  ;;  %v1498_v43 = vpop.f32.mrb[26].mxu0  ;;  %v1572_v19 = vadd.f32 %v1571_v34, %v973_v11  ;;  %v2047_v37 = vmul.f32 -1.442695, %v1493_v14  ;;  %v2770_v34 = vld [vmem:[%s4026_s0 + $0x8] sm:$0xff] }
 0x249   :  { %v2653_v44 = vpop.eup %2652  ;;  %2672 = vrcp.f32 %v1833_v39  ;;  %v1848_v49 = vadd.f32 1.0, %v2651_v41  ;;  %v3862_v50 = vpop.f32.mrb[26].mxu1  ;;  %v1499_v39 = vadd.f32 %v1498_v43, %v961_v55  ;;  %v2048_v55 = vmul.f32 -1.442695, %v1495_v15 }
 0x24a   :  { %v3864_v51 = vpop.f32.mrb[27].mxu0  ;;  %v2655_v52 = vpop.eup %2654  ;;  %2674 = vrcp.f32 %v1846_v42  ;;  %v1847_v54 = vadd.f32 1.0, %v2653_v44 }
 0x24b   :  { %v3872_v58 = vpop.f32.mrb[27].mxu1  ;;  %v2657_v59 = vpop.eup %2656  ;;  %2676 = vrcp.f32 %v1848_v49  ;;  %v1849_v60 = vadd.f32 1.0, %v2655_v52  ;;  %v2049_v49 = vmul.f32 -1.442695, %v1570_v10  ;;  %v1576_v52 = vadd.f32 %v3862_v50, %v969_v57  ;;  %v2776_v10 = vld [vmem:[%s4026_s0 + $0x20] sm:$0xff] }
 0x24c   :  { %v2659_v63 = vpop.eup %2658  ;;  %2678 = vrcp.f32 %v1847_v54  ;;  %v1834_v0 = vadd.f32 1.0, %v2657_v59  ;;  %v3882_v1 = vpop.f32.mrb[28].mxu0  ;;  %v2771_v59 = vld [vmem:[%s4026_s0 + $0x18] sm:$0xff]  ;;  %v2050_v50 = vmul.f32 -1.442695, %v1572_v19  ;;  %v1578_v57 = vadd.f32 %v3872_v58, %v973_v11 }
 0x24d   :  { %v2661_v2 = vpop.eup %2660  ;;  %2680 = vrcp.f32 %v1849_v60  ;;  %v1836_v3 = vadd.f32 1.0, %v2659_v63  ;;  %v3890_v4 = vpop.f32.mrb[28].mxu1  ;;  %v1501_v60 = vadd.f32 %v3864_v51, %v965_v62  ;;  %v2772_v63 = vld [vmem:[%s4026_s0 + $0x80] sm:$0xff]  ;;  %v2063_v51 = vmul.f32 -1.442695, %v1499_v39 }
 0x24e   :  { %v3892_v5 = vpop.f32.mrb[29].mxu0  ;;  %v2663_v53 = vpop.eup %2662  ;;  %2682 = vrcp.f32 %v1834_v0  ;;  %v1835_v6 = vadd.f32 1.0, %v2661_v2  ;;  %v2773_v2 = vld [vmem:[%s4026_s0 + $0x90] sm:$0xff]  ;;  %v1647_v62 = vadd.f32 %v3882_v1, %v3888_v13  ;;  %v2065_v58 = vmul.f32 -1.442695, %v1576_v52  ;;  %v2780_v39 = vld [vmem:[%s4026_s0 + $0xa0] sm:$0xff] }
 0x24f   :  { %v3899_v8 = vpop.f32.mrb[29].mxu1  ;;  %v2665_v56 = vpop.eup %2664  ;;  %2684 = vrcp.f32 %v1836_v3  ;;  %v1837_v9 = vadd.f32 1.0, %v2663_v53  ;;  %v2774_v53 = vld [vmem:[%s4026_s0 + $0x88] sm:$0xff]  ;;  %v1724_v11 = vadd.f32 %v3890_v4, %v3897_v7  ;;  %v2064_v1 = vmul.f32 -1.442695, %v1501_v60  ;;  %v2777_v4 = vld [vmem:[%s4026_s0 + $0x30] sm:$0xff] }
 0x250   :  { %v2667_v47 = vpop.eup %2666  ;;  %2686 = vrcp.f32 %v1835_v6  ;;  %v1850_v48 = vadd.f32 1.0, %v2665_v56  ;;  %v3901_v45 = vpop.f32.mrb[30].mxu0  ;;  %v2775_v56 = vld [vmem:[%s4026_s0 + $0x98] sm:$0xff]  ;;  %v981_v60 = vrot.slane %v3860_v40, %v948_v32 }
 0x251   :  { %v2669_v16 = vpop.eup %2668  ;;  %v1926_v17 = vmul.f32 %v2768_v21, %v2667_v47  ;;  %2688 = vrcp.f32 %v1837_v9  ;;  %v3906_v22 = vpop.f32.mrb[30].mxu1  ;;  %v2053_v19 = vmul.f32 -1.442695, %v1724_v11 }
 0x252   :  { %v3908_v25 = vpop.f32.mrb[31].mxu0  ;;  %v2671_v23 = vpop.eup %2670  ;;  %v1928_v33 = vmul.f32 %v2769_v24, %v2669_v16  ;;  %2690 = vrcp.f32 %v1850_v48  ;;  %v2066_v48 = vmul.f32 -1.442695, %v1578_v57  ;;  %v2051_v16 = vmul.f32 -1.442695, %v1647_v62  ;;  %v2779_v24 = vld [vmem:[%s4026_s0 + $0x38] sm:$0xff] }
 0x253   :  { %v3913_v41 = vpop.f32.mrb[31].mxu1  ;;  %v2673_v42 = vpop.eup %2672  ;;  %1958 = vst [vmem:[#allocation2] sm:$0xff] %v1926_v17  ;;  %v1927_v44 = vmul.f32 %v2770_v34, %v2671_v23  ;;  %2692 = vpow2.f32 %v2061_v20  ;;  %v2778_v17 = vld [vmem:[%s4026_s0 + $0x28] sm:$0xff]  ;;  %v1649_v62 = vadd.f32 %v3892_v5, %v981_v60  ;;  %v1730_v11 = vadd.f32 %v3906_v22, %v3897_v7 }
 0x254   :  { %v2675_v54 = vpop.eup %2674  ;;  %1960 = vst [vmem:[#allocation2 + $0x10] sm:$0xff] %v1928_v33  ;;  %v1929_v43 = vmul.f32 %v2771_v59, %v2673_v42  ;;  %2694 = vpow2.f32 %v2060_v12 }
 0x255   :  { %v2677_v61 = vpop.eup %2676  ;;  %1959 = vst [vmem:[#allocation2 + $0x8] sm:$0xff] %v1927_v44  ;;  %v1942_v0 = vmul.f32 %v2772_v63, %v2675_v54  ;;  %2696 = vpow2.f32 %v2062_v18 }
 0x256   :  { %v2679_v38 = vpop.eup %2678  ;;  %1961 = vst [vmem:[#allocation2 + $0x18] sm:$0xff] %v1929_v43  ;;  %v1944_v3 = vmul.f32 %v2773_v2, %v2677_v61  ;;  %2698 = vpow2.f32 %v2047_v37 }
 0x257   :  { %v2681_v46 = vpop.eup %2680  ;;  %1974 = vst [vmem:[#allocation2 + $0x80] sm:$0xff] %v1942_v0  ;;  %v1943_v6 = vmul.f32 %v2774_v53, %v2679_v38  ;;  %2700 = vpow2.f32 %v2049_v49  ;;  %v989_v0 = vrot.slane %v3860_v40, %v956_v36  ;;  %v1653_v36 = vadd.f32 %v3901_v45, %v3888_v13  ;;  %v2781_v13 = vld [vmem:[%s4026_s0 + $0xb0] sm:$0xff] }
 0x258   :  { %v2683_v14 = vpop.eup %2682  ;;  %1976 = vst [vmem:[#allocation2 + $0x90] sm:$0xff] %v1944_v3  ;;  %v1945_v9 = vmul.f32 %v2775_v56, %v2681_v46  ;;  %2702 = vpow2.f32 %v2048_v55  ;;  %v2052_v56 = vmul.f32 -1.442695, %v1649_v62 }
 0x259   :  { %v2685_v20 = vpop.eup %2684  ;;  %1975 = vst [vmem:[#allocation2 + $0x88] sm:$0xff] %v1943_v6  ;;  %v1930_v47 = vmul.f32 %v2776_v10, %v2683_v14  ;;  %2704 = vpow2.f32 %v2050_v50  ;;  %v1726_v53 = vadd.f32 %v3899_v8, %v989_v0  ;;  %v1732_v10 = vadd.f32 %v3913_v41, %v989_v0  ;;  %v2783_v41 = vld [vmem:[%s4026_s0 + $0xb8] sm:$0xff] }
 0x25a   :  { %v2687_v12 = vpop.eup %2686  ;;  %1977 = vst [vmem:[#allocation2 + $0x98] sm:$0xff] %v1945_v9  ;;  %v1932_v15 = vmul.f32 %v2777_v4, %v2685_v20  ;;  %2706 = vpow2.f32 %v2063_v51  ;;  %v1655_v9 = vadd.f32 %v3908_v25, %v981_v60  ;;  %v2067_v7 = vmul.f32 -1.442695, %v1653_v36 }
 0x25b   :  { %v2689_v21 = vpop.eup %2688  ;;  %1962 = vst [vmem:[#allocation2 + $0x20] sm:$0xff] %v1930_v47  ;;  %v1931_v18 = vmul.f32 %v2778_v17, %v2687_v12  ;;  %2708 = vpow2.f32 %v2065_v58  ;;  %v2054_v20 = vmul.f32 -1.442695, %v1726_v53  ;;  %v2069_v12 = vmul.f32 -1.442695, %v1730_v11  ;;  %v2784_v17 = vld [vmem:[%s4026_s0 + $0x40] sm:$0xff] }
 0x25c   :  { %v2691_v23 = vpop.eup %2690  ;;  %1964 = vst [vmem:[#allocation2 + $0x30] sm:$0xff] %v1932_v15  ;;  %v1933_v33 = vmul.f32 %v2779_v24, %v2689_v21  ;;  %2710 = vpow2.f32 %v2064_v1  ;;  %v2785_v24 = vld [vmem:[%s4026_s0 + $0x50] sm:$0xff] }
 0x25d   :  { %v2693_v37 = vpop.eup %2692  ;;  %1963 = vst [vmem:[#allocation2 + $0x28] sm:$0xff] %v1931_v18  ;;  %v1946_v42 = vmul.f32 %v2780_v39, %v2691_v23  ;;  %2712 = vpow2.f32 %v2066_v48  ;;  %v2782_v48 = vld [vmem:[%s4026_s0 + $0xa8] sm:$0xff] }
 0x25e   :  { %v2695_v34 = vpop.eup %2694  ;;  %1965 = vst [vmem:[#allocation2 + $0x38] sm:$0xff] %v1933_v33  ;;  %v1852_v44 = vadd.f32 1.0, %v2693_v37  ;;  %2714 = vpow2.f32 %v2051_v16  ;;  %v2068_v16 = vmul.f32 -1.442695, %v1655_v9  ;;  %v2786_v39 = vld [vmem:[%s4026_s0 + $0x48] sm:$0xff] }
 0x25f   :  { %v2697_v49 = vpop.eup %2696  ;;  %1978 = vst [vmem:[#allocation2 + $0xa0] sm:$0xff] %v1946_v42  ;;  %v1851_v52 = vadd.f32 1.0, %v2695_v34  ;;  %2716 = vpow2.f32 %v2053_v19  ;;  %v2070_v19 = vmul.f32 -1.442695, %v1732_v10 }
 0x260   :  { %v2699_v54 = vpop.eup %2698  ;;  %2718 = vrcp.f32 %v1852_v44  ;;  %v1853_v59 = vadd.f32 1.0, %v2697_v49  ;;  %v2787_v44 = vld [vmem:[%s4026_s0 + $0x58] sm:$0xff] }
 0x261   :  { %v2701_v43 = vpop.eup %2700  ;;  %2720 = vrcp.f32 %v1851_v52  ;;  %v1838_v55 = vadd.f32 1.0, %v2699_v54  ;;  %v2788_v54 = vld [vmem:[%s4026_s0 + $0xc0] sm:$0xff] }
 0x262   :  { %v2703_v61 = vpop.eup %2702  ;;  %2722 = vrcp.f32 %v1853_v59  ;;  %v1840_v63 = vadd.f32 1.0, %v2701_v43 }
 0x263   :  { %v2705_v50 = vpop.eup %2704  ;;  %2724 = vrcp.f32 %v1838_v55  ;;  %v1839_v57 = vadd.f32 1.0, %v2703_v61  ;;  %v2789_v55 = vld [vmem:[%s4026_s0 + $0xd0] sm:$0xff] }
 0x264   :  { %v2707_v38 = vpop.eup %2706  ;;  %2726 = vrcp.f32 %v1840_v63  ;;  %v1841_v2 = vadd.f32 1.0, %v2705_v50  ;;  %v2790_v63 = vld [vmem:[%s4026_s0 + $0xc8] sm:$0xff] }
 0x265   :  { %v2709_v3 = vpop.eup %2708  ;;  %2728 = vrcp.f32 %v1839_v57  ;;  %v1854_v51 = vadd.f32 1.0, %v2707_v38  ;;  %v2791_v57 = vld [vmem:[%s4026_s0 + $0xd8] sm:$0xff] }
 0x266   :  { %v2711_v46 = vpop.eup %2710  ;;  %2730 = vrcp.f32 %v1841_v2  ;;  %v1856_v32 = vadd.f32 1.0, %v2709_v3 }
 0x267   :  { %v2713_v6 = vpop.eup %2712  ;;  %2732 = vrcp.f32 %v1854_v51  ;;  %v1855_v35 = vadd.f32 1.0, %v2711_v46 }
 0x268   :  { %v2715_v40 = vpop.eup %2714  ;;  %2734 = vrcp.f32 %v1856_v32  ;;  %v1857_v58 = vadd.f32 1.0, %v2713_v6 }
 0x269   :  { %v2717_v14 = vpop.eup %2716  ;;  %2736 = vrcp.f32 %v1855_v35  ;;  %v1842_v5 = vadd.f32 1.0, %v2715_v40 }
 0x26a   :  { %v2719_v1 = vpop.eup %2718  ;;  %2738 = vrcp.f32 %v1857_v58  ;;  %v1844_v8 = vadd.f32 1.0, %v2717_v14 }
 0x26b   :  { %v2721_v47 = vpop.eup %2720  ;;  %v1948_v45 = vmul.f32 %v2781_v13, %v2719_v1  ;;  %2740 = vrcp.f32 %v1842_v5 }
 0x26c   :  { %v2723_v22 = vpop.eup %2722  ;;  %v1947_v25 = vmul.f32 %v2782_v48, %v2721_v47  ;;  %2742 = vrcp.f32 %v1844_v8  ;;  %v2793_v8 = vld [vmem:[%s4026_s0 + $0x78] sm:$0xff] }
 0x26d   :  { %v2725_v4 = vpop.eup %2724  ;;  %1980 = vst [vmem:[#allocation2 + $0xb0] sm:$0xff] %v1948_v45  ;;  %v1949_v15 = vmul.f32 %v2783_v41, %v2723_v22  ;;  %2744 = vpow2.f32 %v2052_v56  ;;  %v2792_v56 = vld [vmem:[%s4026_s0 + $0x68] sm:$0xff]  ;;  %s2794_s0 = scalar_lea.vmem %s1996_s26, 4096 }
 0x26e   :  { %v2727_v21 = vpop.eup %2726  ;;  %1979 = vst [vmem:[#allocation2 + $0xa8] sm:$0xff] %v1947_v25  ;;  %v1934_v18 = vmul.f32 %v2784_v17, %v2725_v4  ;;  %2746 = vpow2.f32 %v2054_v20  ;;  %p2795_p0 = scmp.ne.s32.totalorder %s1996_s26, %s2794_s0  ;;  %p2800_p2 = scmp.lt.s32.totalorder %s2794_s0, %s2794_s0 }
 0x26f   :  { %v2729_v23 = vpop.eup %2728  ;;  %1981 = vst [vmem:[#allocation2 + $0xb8] sm:$0xff] %v1949_v15  ;;  %v1936_v33 = vmul.f32 %v2785_v24, %v2727_v21  ;;  %2748 = vpow2.f32 %v2067_v7 }
 0x270   :  { %v2731_v37 = vpop.eup %2730  ;;  %1966 = vst [vmem:[#allocation2 + $0x40] sm:$0xff] %v1934_v18  ;;  %v1935_v42 = vmul.f32 %v2786_v39, %v2729_v23  ;;  %2750 = vpow2.f32 %v2069_v12  ;;  %p2801_p3 = por %p2800_p2, %p2799_p1 }
 0x271   :  { %v2733_v34 = vpop.eup %2732  ;;  %1968 = vst [vmem:[#allocation2 + $0x50] sm:$0xff] %v1936_v33  ;;  %v1937_v49 = vmul.f32 %v2787_v44, %v2731_v37  ;;  %2752 = vpow2.f32 %v2068_v16 }
 0x272   :  { %v2735_v52 = vpop.eup %2734  ;;  %1967 = vst [vmem:[#allocation2 + $0x48] sm:$0xff] %v1935_v42  ;;  %v1950_v59 = vmul.f32 %v2788_v54, %v2733_v34  ;;  %2754 = vpow2.f32 %v2070_v19  ;;  %p2802_p4 = pnand %p2801_p3, %p2795_p0 }
 0x273   :  { %v2737_v43 = vpop.eup %2736  ;;  %1969 = vst [vmem:[#allocation2 + $0x58] sm:$0xff] %v1937_v49  ;;  %v1952_v60 = vmul.f32 %v2789_v55, %v2735_v52 }
 0x274   :  { %v2739_v61 = vpop.eup %2738  ;;  %1982 = vst [vmem:[#allocation2 + $0xc0] sm:$0xff] %v1950_v59  ;;  %v1951_v0 = vmul.f32 %v2790_v63, %v2737_v43 }
 0x275   :  { %v2741_v50 = vpop.eup %2740  ;;  %1984 = vst [vmem:[#allocation2 + $0xd0] sm:$0xff] %v1952_v60  ;;  %v1953_v38 = vmul.f32 %v2791_v57, %v2739_v61 }
 0x276   :  { %v2743_v2 = vpop.eup %2742  ;;  %1983 = vst [vmem:[#allocation2 + $0xc8] sm:$0xff] %v1951_v0  ;;  %v1938_v3 = vmul.f32 %v2741_v50, %v3702_v26 }
 0x277   :  { %v2745_v51 = vpop.eup %2744  ;;  %1985 = vst [vmem:[#allocation2 + $0xd8] sm:$0xff] %v1953_v38  ;;  %v1940_v62 = vmul.f32 %v2743_v2, %v3707_v27 }
 0x278   :  { %v2747_v46 = vpop.eup %2746  ;;  %1970 = vst [vmem:[#allocation2 + $0x60] sm:$0xff] %v1938_v3  ;;  %v1843_v32 = vadd.f32 1.0, %v2745_v51 }
 0x279   :  { %v2749_v53 = vpop.eup %2748  ;;  %1972 = vst [vmem:[#allocation2 + $0x70] sm:$0xff] %v1940_v62  ;;  %v1845_v6 = vadd.f32 1.0, %v2747_v46 }
 0x27a   :  { %v2751_v35 = vpop.eup %2750  ;;  %2756 = vrcp.f32 %v1843_v32  ;;  %v1858_v36 = vadd.f32 1.0, %v2749_v53 }
 0x27b   :  { %v2753_v40 = vpop.eup %2752  ;;  %2758 = vrcp.f32 %v1845_v6  ;;  %v1860_v58 = vadd.f32 1.0, %v2751_v35 }
 0x27c   :  { %v2755_v11 = vpop.eup %2754  ;;  %2760 = vrcp.f32 %v1858_v36  ;;  %v1859_v14 = vadd.f32 1.0, %v2753_v40 }
 0x27d   :  { %2762 = vrcp.f32 %v1860_v58  ;;  %v1861_v26 = vadd.f32 1.0, %v2755_v11 }
 0x27e   :  { %2764 = vrcp.f32 %v1859_v14 }
 0x27f   :  { %2766 = vrcp.f32 %v1861_v26 }
 0x284   :  { %v2757_v27 = vpop.eup %2756 }
 0x285   :  { %v2759_v5 = vpop.eup %2758  ;;  %v1939_v9 = vmul.f32 %v2792_v56, %v2757_v27 }
 0x286   :  { %v2761_v1 = vpop.eup %2760  ;;  %v1941_v20 = vmul.f32 %v2793_v8, %v2759_v5 }
 0x287   :  { %v2763_v10 = vpop.eup %2762  ;;  %1971 = vst [vmem:[#allocation2 + $0x68] sm:$0xff] %v1939_v9  ;;  %v1954_v47 = vmul.f32 %v2761_v1, %v3725_v30 }
 0x288   :  { %v2765_v13 = vpop.eup %2764  ;;  %1973 = vst [vmem:[#allocation2 + $0x78] sm:$0xff] %v1941_v20  ;;  %v1956_v45 = vmul.f32 %v2763_v10, %v3731_v31 }
 0x289   :  { %v2767_v7 = vpop.eup %2766  ;;  %1986 = vst [vmem:[#allocation2 + $0xe0] sm:$0xff] %v1954_v47  ;;  %v1955_v22 = vmul.f32 %v2765_v13, %v3712_v28 }
 0x28a   :  { %1988 = vst [vmem:[#allocation2 + $0xf0] sm:$0xff] %v1956_v45  ;;  %v1957_v48 = vmul.f32 %v2767_v7, %v3717_v29 }
 0x28b   :  { %1987 = vst [vmem:[#allocation2 + $0xe8] sm:$0xff] %v1955_v22 }
 0x28c   :  { %1989 = vst [vmem:[#allocation2 + $0xf8] sm:$0xff] %v1957_v48 }
 0x28d   :  { %2805 = shalt.err (!%p2802_p4)
}
 0x28e   :  { %s2806_s28 = scalar_lea.hbm %s4031_s5, 4096 }
 0x28f   :  { %p2807_p5 = scmp.ne.s32.totalorder %s4031_s5, %s2806_s28  ;;  %p2810_p6 = scmp.lt.u32.totalorder %s2806_s28, %s4031_s5 }
 0x291   :  { %p2812_p7 = pnand %p2810_p6, %p2807_p5 }
 0x293   :  { %2815 = shalt.err (!%p2812_p7)
}
 0x294   :  { %s2821_s7 = smov 2048   ;;  %s2822_s8 = smov 128  }
 0x295   :  { %2001 = dma.vmem_to_hbm [thread:$0]  %s1996_s26, 4096, %s4031_s5, [#allocation3], %s2821_s7, %s2821_s7, %s2822_s8  }
 0x296   :  { %2816 = dma.done.wait [#allocation3], 4096  }
 0x297   :  { %2817 = vsyncadd [#allocation3], 4294963200 }
 0x298   :  { %2005 = vsyncpa [#allocation3], 1 }

</bundles_post_ra>
